<compile_context>
chip_gen: v7x
topology: tpu7x:2x2x1
jax: 0.10.0
libtpu: 0.0.40
codegen_flags: <defaults>
</compile_context>

<pallas_src>
import numpy as np
import jax
import jax.numpy as jnp
from jax.experimental import pallas as pl
from jax.experimental.pallas import tpu as pltpu

_HI = jax.lax.Precision.HIGHEST
_LANE = 128


# ----------------------------------------------------------------------------
# Parameter / constant construction (mirrors TpsGridGen.__init__)
# ----------------------------------------------------------------------------
def make_tps_constants(out_h, out_w, grid_size):
    # sampling grid (same convention as np.meshgrid(linspace(w), linspace(h)))
    gx, gy = np.meshgrid(
        np.linspace(-1.0, 1.0, out_w, dtype=np.float32),
        np.linspace(-1.0, 1.0, out_h, dtype=np.float32),
    )
    gx = gx.astype(np.float32)  # (H, W)
    gy = gy.astype(np.float32)  # (H, W)

    # control points
    axis_coords = np.linspace(-1.0, 1.0, grid_size).astype(np.float32)
    N = grid_size * grid_size
    P_Y, P_X = np.meshgrid(axis_coords, axis_coords)
    P_X = np.reshape(P_X, (-1, 1)).astype(np.float32)  # (N, 1)
    P_Y = np.reshape(P_Y, (-1, 1)).astype(np.float32)  # (N, 1)

    # control points form a separable tensor grid: px[k] = ax[k//gs], py[k] = ax[k%gs]
    assert np.array_equal(P_X[:, 0], axis_coords[np.arange(N) // grid_size])
    assert np.array_equal(P_Y[:, 0], axis_coords[np.arange(N) % grid_size])

    # L inverse (compute_L_inverse)
    # TODO(synk): np.linalg.inv of the (N+3, N+3) TPS system has no Pallas equivalent;
    #             it is O(N^3) on a 12x12 matrix and stays in numpy.
    Xmat = np.broadcast_to(P_X, (N, N))
    Ymat = np.broadcast_to(P_Y, (N, N))
    d2 = (Xmat - Xmat.T) ** 2 + (Ymat - Ymat.T) ** 2
    d2 = np.where(d2 == 0.0, 1.0, d2)
    K = d2 * np.log(d2)
    Pm = np.concatenate([np.ones((N, 1), np.float32), P_X, P_Y], axis=1)  # (N, 3)
    L = np.block([[K, Pm], [Pm.T, np.zeros((3, 3), np.float32)]]).astype(np.float64)
    Li = np.linalg.inv(L).astype(np.float32)  # (N+3, N+3)

    return gx, gy, P_X[:, 0], P_Y[:, 0], axis_coords, Li, N


# ----------------------------------------------------------------------------
# Pallas kernel: per-pixel TPS evaluation, batch/channel folded into coefficients
# ----------------------------------------------------------------------------
def _tps_kernel(GS, B, TS, CS):
    """Kernel over one (TS, 128) pixel tile.

    Refs:
      c_ref  : SMEM (2B, N+3)   rows ordered (b, channel): [a0, a1, a2, w_0..w_{N-1}]
      ax_ref : SMEM (GS,)       distinct control-point axis coordinates
      gx_ref : VMEM (TS, 128)   sampling grid x (lane-dense flattened pixels)
      gy_ref : VMEM (TS, 128)   sampling grid y
      e_ref  : VMEM (2,128,256) 0/1 interleave matrices (Ex: lane c->2c, Ey: c->2c+1)
      o_ref  : VMEM (B, TS, 256) per-pixel interleaved (X', Y') for each batch element
    """
    N = GS * GS
    R2 = 2 * B
    n_chunks = TS // CS

    def kernel(c_ref, ax_ref, gx_ref, gy_ref, e_ref, o_ref):
        # Hoist all SMEM scalar reads out of the (unrolled) hot loop.
        coef = [[c_ref[r, j] for j in range(N + 3)] for r in range(R2)]
        axv = [ax_ref[i] for i in range(GS)]

        # Static Python loop == full unroll (review: the hidden fori_loop cost ~35%).
        for ci in range(n_chunks):
            s0 = ci * CS                                  # static start -> aligned loads
            gx = gx_ref[pl.ds(s0, CS), :]                 # (CS, 128)
            gy = gy_ref[pl.ds(s0, CS), :]                 # (CS, 128)

            # affine part: a0 + a1*x + a2*y, per (batch, channel) row
            accs = [coef[r][0] + coef[r][1] * gx + coef[r][2] * gy
                    for r in range(R2)]

            # separable radial-basis distances: d2_{ij} = (gx-ax[i])^2 + (gy-ax[j])^2.
            # dy2 planes are kept live (GS of them); dx2 is recomputed per i to bound
            # vreg pressure.  u = d2*log(d2) is computed ONCE per pixel and shared by
            # every batch element and both X/Y channels.
            dy2 = []
            for j in range(GS):
                dyj = gy - axv[j]
                dy2.append(dyj * dyj)
            for i in range(GS):
                dxi = gx - axv[i]
                dx2i = dxi * dxi
                for j in range(GS):
                    k = i * GS + j                        # control-point index
                    d2 = jnp.maximum(dx2i + dy2[j], jnp.float32(1e-30))
                    u = d2 * jnp.log(d2)                  # EUP log (free slot)
                    for r in range(R2):
                        accs[r] = accs[r] + coef[r][3 + k] * u

            # Interleave X'/Y' per pixel into the final (..., 2) memory layout with an
            # exact 0/1 permutation matmul on the otherwise-idle MXU; precision=HIGHEST
            # keeps the copy f32-accurate.  Stores stay full-lane (256-wide) vst.
            # TODO(synk): for 2B >= ~16 the whole coef*u accumulation should also move
            #             to an MXU (pixels, N+3) x (N+3, 2B) matmul.
            for b in range(B):
                xy = jnp.dot(accs[2 * b], e_ref[0], precision=_HI,
                             preferred_element_type=jnp.float32)
                xy = xy + jnp.dot(accs[2 * b + 1], e_ref[1], precision=_HI,
                                  preferred_element_type=jnp.float32)
                o_ref[b, pl.ds(s0, CS), :] = xy

    return kernel


# ----------------------------------------------------------------------------
# Wrapper
# ----------------------------------------------------------------------------
def tps_grid_gen_pallas(theta, *, out_h, out_w, grid_size=3, tile_rows=512):
    """Pallas implementation of TpsGridGen.forward. Returns (B, H, W, 2) f32."""
    gx_np, gy_np, px_np, py_np, ax_np, Li_np, N = make_tps_constants(
        out_h, out_w, grid_size)
    GS = grid_size

    theta = theta.astype(jnp.float32)
    if theta.ndim == 4:  # (B, 2N, 1, 1) form also accepted, as in PyTorch
        theta = theta[:, :, 0, 0]
    B = theta.shape[0]

    px = jnp.asarray(px_np)                      # (N,)
    py = jnp.asarray(py_np)                      # (N,)
    Li = jnp.asarray(Li_np)                      # (N+3, N+3)

    # Q = theta + base control points  (B, N)
    Q_X = theta[:, :N] + px[None, :]
    Q_Y = theta[:, N:] + py[None, :]

    # tiny matmuls with L^-1 (glue): W = Li[:N,:N] @ Q,  A = Li[N:,:N] @ Q
    W_X = jnp.einsum('ij,bj->bi', Li[:N, :N], Q_X, precision=_HI)   # (B, N)
    W_Y = jnp.einsum('ij,bj->bi', Li[:N, :N], Q_Y, precision=_HI)   # (B, N)
    A_X = jnp.einsum('ij,bj->bi', Li[N:, :N], Q_X, precision=_HI)   # (B, 3)
    A_Y = jnp.einsum('ij,bj->bi', Li[N:, :N], Q_Y, precision=_HI)   # (B, 3)

    # coefficient table: row 2b = X-channel of batch b, row 2b+1 = Y-channel
    CX = jnp.concatenate([A_X, W_X], axis=1)     # (B, N+3)
    CY = jnp.concatenate([A_Y, W_Y], axis=1)     # (B, N+3)
    C = jnp.stack([CX, CY], axis=1).reshape(2 * B, N + 3)

    # --- lane-dense flattened pixel layout -----------------------------------
    H, W = out_h, out_w
    P = H * W
    granule = 8 * _LANE                              # minimum (8, 128) tile
    R = -(-P // granule) * 8                         # rows of 128 pixels (mult of 8)

    # Tile rows: as large as possible, but keep >= 2 grid tiles so the "parallel"
    # axis can shard across the 2 TensorCores on v7x.
    TS = min(tile_rows, R)
    if TS == R and R >= 16:
        TS = max(8, (R // 2) // 8 * 8)
    R = -(-R // TS) * TS                             # pad row count to a tile multiple
    P_pad = R * _LANE
    num_tiles = R // TS

    # Inner register-chunk rows: adaptive in batch (vreg-pressure guard), divides TS.
    cs_cap = max(8, min(32, 256 // (2 * B)))
    CS = 8
    for c in (32, 24, 16, 8):
        if c <= cs_cap and c <= TS and TS % c == 0:
            CS = c
            break

    def to_plane(a):
        flat = np.zeros((P_pad,), np.float32)
        flat[:P] = a.reshape(-1)
        return flat.reshape(R, _LANE)

    gx2 = jnp.asarray(to_plane(gx_np))               # (R, 128)
    gy2 = jnp.asarray(to_plane(gy_np))               # (R, 128)

    # 0/1 interleave matrices: Ex scatters lane c -> 2c, Ey scatters lane c -> 2c+1.
    E_np = np.zeros((2, _LANE, 2 * _LANE), np.float32)
    E_np[0, np.arange(_LANE), 2 * np.arange(_LANE)] = 1.0
    E_np[1, np.arange(_LANE), 2 * np.arange(_LANE) + 1] = 1.0
    E = jnp.asarray(E_np)                            # (2, 128, 256)

    smem_spec = pl.BlockSpec(memory_space=pltpu.MemorySpace.SMEM)

    out = pl.pallas_call(
        _tps_kernel(GS, B, TS, CS),
        out_shape=jax.ShapeDtypeStruct((B, R, 2 * _LANE), jnp.float32),
        grid_spec=pltpu.PrefetchScalarGridSpec(
            num_scalar_prefetch=0,
            grid=(num_tiles,),
            in_specs=[
                smem_spec,                                            # C   (2B, N+3)
                smem_spec,                                            # ax  (GS,)
                pl.BlockSpec((TS, _LANE), lambda t: (t, 0)),          # grid_X plane
                pl.BlockSpec((TS, _LANE), lambda t: (t, 0)),          # grid_Y plane
                pl.BlockSpec((2, _LANE, 2 * _LANE), lambda t: (0, 0, 0)),  # E
            ],
            out_specs=pl.BlockSpec((B, TS, 2 * _LANE), lambda t: (0, t, 0)),
        ),
        compiler_params=pltpu.CompilerParams(
            dimension_semantics=("parallel",)),
    )(C, jnp.asarray(ax_np), gx2, gy2, E)

    # (B, R, 256) is already pixel-interleaved (x0,y0,x1,y1,...): pure reshape
    # (plus a slice only when H*W needed padding; zero-cost for e.g. 256x192).
    out = out.reshape(B, R * _LANE, 2)
    if P != R * _LANE:
        out = out[:, :P, :]
    return out.reshape(B, H, W, 2)


# ----------------------------------------------------------------------------
# Pure-JAX reference (mirrors apply_transformation) for correctness checking
# ----------------------------------------------------------------------------
def tps_grid_gen_ref(theta, *, out_h, out_w, grid_size=3):
    gx_np, gy_np, px_np, py_np, _, Li_np, N = make_tps_constants(out_h, out_w, grid_size)
    theta = theta.astype(jnp.float32)
    if theta.ndim == 4:
        theta = theta[:, :, 0, 0]
    px = jnp.asarray(px_np); py = jnp.asarray(py_np)
    Li = jnp.asarray(Li_np)
    gx = jnp.asarray(gx_np); gy = jnp.asarray(gy_np)

    Q_X = theta[:, :N] + px[None, :]
    Q_Y = theta[:, N:] + py[None, :]
    W_X = jnp.einsum('ij,bj->bi', Li[:N, :N], Q_X, precision=_HI)
    W_Y = jnp.einsum('ij,bj->bi', Li[:N, :N], Q_Y, precision=_HI)
    A_X = jnp.einsum('ij,bj->bi', Li[N:, :N], Q_X, precision=_HI)
    A_Y = jnp.einsum('ij,bj->bi', Li[N:, :N], Q_Y, precision=_HI)

    d2 = (gx[..., None] - px[None, None, :]) ** 2 + (gy[..., None] - py[None, None, :]) ** 2
    d2 = jnp.where(d2 == 0.0, 1.0, d2)
    U = d2 * jnp.log(d2)                                        # (H, W, N)

    xprime = (A_X[:, 0, None, None] + A_X[:, 1, None, None] * gx[None]
              + A_X[:, 2, None, None] * gy[None]
              + jnp.einsum('bk,hwk->bhw', W_X, U, precision=_HI))
    yprime = (A_Y[:, 0, None, None] + A_Y[:, 1, None, None] * gx[None]
              + A_Y[:, 2, None, None] * gy[None]
              + jnp.einsum('bk,hwk->bhw', W_Y, U, precision=_HI))
    return jnp.stack([xprime, yprime], axis=-1)


if __name__ == "__main__":
    B = 2
    GRID_SIZE = 3
    N = GRID_SIZE * GRID_SIZE

    key = jax.random.PRNGKey(0)
    theta = 0.1 * jax.random.normal(key, (B, 2 * N), dtype=jnp.float32)

    # config 1: W a multiple of 128 (exactly lane-dense, no padding)
    # config 2: odd spatial size that exercises the flatten/pad/slice path
    # config 3: small non-power-of-two row count (3 grid tiles)
    for (OUT_H, OUT_W) in [(16, 128), (24, 160), (64, 48)]:
        out = tps_grid_gen_pallas(theta, out_h=OUT_H, out_w=OUT_W, grid_size=GRID_SIZE)
        out = jax.block_until_ready(out)

        ref = tps_grid_gen_ref(theta, out_h=OUT_H, out_w=OUT_W, grid_size=GRID_SIZE)
        ref = jax.block_until_ready(ref)

        assert out.shape == (B, OUT_H, OUT_W, 2), out.shape
        np.testing.assert_allclose(np.asarray(out), np.asarray(ref),
                                   rtol=1e-4, atol=1e-4)

    print("KERNEL_OK")
</pallas_src>

<mosaic_0001>
module attributes {stable_mosaic.version = 11 : i64} {
  func.func @kernel(%arg0: i32, %arg1: memref<4x12xf32, #tpu.memory_space<smem>>, %arg2: memref<3xf32, #tpu.memory_space<smem>>, %arg3: memref<8x128xf32, #tpu.memory_space<vmem>>, %arg4: memref<8x128xf32, #tpu.memory_space<vmem>>, %arg5: memref<2x128x256xf32, #tpu.memory_space<vmem>>, %arg6: memref<2x8x256xf32, #tpu.memory_space<vmem>>) attributes {dimension_semantics = [#tpu.dimension_semantics<parallel>], iteration_bounds = array<i64: 2>, scalar_prefetch = 0 : i64, scratch_operands = 0 : i64, tpu.core_type = #tpu.core_type<tc>, window_params = [{transform_indices = @transform_0, window_bounds = array<i64: 4, 12>}, {transform_indices = @transform_1, window_bounds = array<i64: 3>}, {transform_indices = @transform_2, window_bounds = array<i64: 8, 128>}, {transform_indices = @transform_3, window_bounds = array<i64: 8, 128>}, {pipeline_mode = #tpu.pipeline_mode<synchronous>, transform_indices = @transform_4, window_bounds = array<i64: 2, 128, 256>}, {transform_indices = @transform_5, window_bounds = array<i64: 2, 8, 256>}]} {
    %c0 = arith.constant 0 : index
    %c0_0 = arith.constant 0 : index
    %0 = memref.load %arg1[%c0, %c0_0] : memref<4x12xf32, #tpu.memory_space<smem>>
    %c0_1 = arith.constant 0 : index
    %c1 = arith.constant 1 : index
    %1 = memref.load %arg1[%c0_1, %c1] : memref<4x12xf32, #tpu.memory_space<smem>>
    %c0_2 = arith.constant 0 : index
    %c2 = arith.constant 2 : index
    %2 = memref.load %arg1[%c0_2, %c2] : memref<4x12xf32, #tpu.memory_space<smem>>
    %c0_3 = arith.constant 0 : index
    %c3 = arith.constant 3 : index
    %3 = memref.load %arg1[%c0_3, %c3] : memref<4x12xf32, #tpu.memory_space<smem>>
    %c0_4 = arith.constant 0 : index
    %c4 = arith.constant 4 : index
    %4 = memref.load %arg1[%c0_4, %c4] : memref<4x12xf32, #tpu.memory_space<smem>>
    %c0_5 = arith.constant 0 : index
    %c5 = arith.constant 5 : index
    %5 = memref.load %arg1[%c0_5, %c5] : memref<4x12xf32, #tpu.memory_space<smem>>
    %c0_6 = arith.constant 0 : index
    %c6 = arith.constant 6 : index
    %6 = memref.load %arg1[%c0_6, %c6] : memref<4x12xf32, #tpu.memory_space<smem>>
    %c0_7 = arith.constant 0 : index
    %c7 = arith.constant 7 : index
    %7 = memref.load %arg1[%c0_7, %c7] : memref<4x12xf32, #tpu.memory_space<smem>>
    %c0_8 = arith.constant 0 : index
    %c8 = arith.constant 8 : index
    %8 = memref.load %arg1[%c0_8, %c8] : memref<4x12xf32, #tpu.memory_space<smem>>
    %c0_9 = arith.constant 0 : index
    %c9 = arith.constant 9 : index
    %9 = memref.load %arg1[%c0_9, %c9] : memref<4x12xf32, #tpu.memory_space<smem>>
    %c0_10 = arith.constant 0 : index
    %c10 = arith.constant 10 : index
    %10 = memref.load %arg1[%c0_10, %c10] : memref<4x12xf32, #tpu.memory_space<smem>>
    %c0_11 = arith.constant 0 : index
    %c11 = arith.constant 11 : index
    %11 = memref.load %arg1[%c0_11, %c11] : memref<4x12xf32, #tpu.memory_space<smem>>
    %c1_12 = arith.constant 1 : index
    %c0_13 = arith.constant 0 : index
    %12 = memref.load %arg1[%c1_12, %c0_13] : memref<4x12xf32, #tpu.memory_space<smem>>
    %c1_14 = arith.constant 1 : index
    %c1_15 = arith.constant 1 : index
    %13 = memref.load %arg1[%c1_14, %c1_15] : memref<4x12xf32, #tpu.memory_space<smem>>
    %c1_16 = arith.constant 1 : index
    %c2_17 = arith.constant 2 : index
    %14 = memref.load %arg1[%c1_16, %c2_17] : memref<4x12xf32, #tpu.memory_space<smem>>
    %c1_18 = arith.constant 1 : index
    %c3_19 = arith.constant 3 : index
    %15 = memref.load %arg1[%c1_18, %c3_19] : memref<4x12xf32, #tpu.memory_space<smem>>
    %c1_20 = arith.constant 1 : index
    %c4_21 = arith.constant 4 : index
    %16 = memref.load %arg1[%c1_20, %c4_21] : memref<4x12xf32, #tpu.memory_space<smem>>
    %c1_22 = arith.constant 1 : index
    %c5_23 = arith.constant 5 : index
    %17 = memref.load %arg1[%c1_22, %c5_23] : memref<4x12xf32, #tpu.memory_space<smem>>
    %c1_24 = arith.constant 1 : index
    %c6_25 = arith.constant 6 : index
    %18 = memref.load %arg1[%c1_24, %c6_25] : memref<4x12xf32, #tpu.memory_space<smem>>
    %c1_26 = arith.constant 1 : index
    %c7_27 = arith.constant 7 : index
    %19 = memref.load %arg1[%c1_26, %c7_27] : memref<4x12xf32, #tpu.memory_space<smem>>
    %c1_28 = arith.constant 1 : index
    %c8_29 = arith.constant 8 : index
    %20 = memref.load %arg1[%c1_28, %c8_29] : memref<4x12xf32, #tpu.memory_space<smem>>
    %c1_30 = arith.constant 1 : index
    %c9_31 = arith.constant 9 : index
    %21 = memref.load %arg1[%c1_30, %c9_31] : memref<4x12xf32, #tpu.memory_space<smem>>
    %c1_32 = arith.constant 1 : index
    %c10_33 = arith.constant 10 : index
    %22 = memref.load %arg1[%c1_32, %c10_33] : memref<4x12xf32, #tpu.memory_space<smem>>
    %c1_34 = arith.constant 1 : index
    %c11_35 = arith.constant 11 : index
    %23 = memref.load %arg1[%c1_34, %c11_35] : memref<4x12xf32, #tpu.memory_space<smem>>
    %c2_36 = arith.constant 2 : index
    %c0_37 = arith.constant 0 : index
    %24 = memref.load %arg1[%c2_36, %c0_37] : memref<4x12xf32, #tpu.memory_space<smem>>
    %c2_38 = arith.constant 2 : index
    %c1_39 = arith.constant 1 : index
    %25 = memref.load %arg1[%c2_38, %c1_39] : memref<4x12xf32, #tpu.memory_space<smem>>
    %c2_40 = arith.constant 2 : index
    %c2_41 = arith.constant 2 : index
    %26 = memref.load %arg1[%c2_40, %c2_41] : memref<4x12xf32, #tpu.memory_space<smem>>
    %c2_42 = arith.constant 2 : index
    %c3_43 = arith.constant 3 : index
    %27 = memref.load %arg1[%c2_42, %c3_43] : memref<4x12xf32, #tpu.memory_space<smem>>
    %c2_44 = arith.constant 2 : index
    %c4_45 = arith.constant 4 : index
    %28 = memref.load %arg1[%c2_44, %c4_45] : memref<4x12xf32, #tpu.memory_space<smem>>
    %c2_46 = arith.constant 2 : index
    %c5_47 = arith.constant 5 : index
    %29 = memref.load %arg1[%c2_46, %c5_47] : memref<4x12xf32, #tpu.memory_space<smem>>
    %c2_48 = arith.constant 2 : index
    %c6_49 = arith.constant 6 : index
    %30 = memref.load %arg1[%c2_48, %c6_49] : memref<4x12xf32, #tpu.memory_space<smem>>
    %c2_50 = arith.constant 2 : index
    %c7_51 = arith.constant 7 : index
    %31 = memref.load %arg1[%c2_50, %c7_51] : memref<4x12xf32, #tpu.memory_space<smem>>
    %c2_52 = arith.constant 2 : index
    %c8_53 = arith.constant 8 : index
    %32 = memref.load %arg1[%c2_52, %c8_53] : memref<4x12xf32, #tpu.memory_space<smem>>
    %c2_54 = arith.constant 2 : index
    %c9_55 = arith.constant 9 : index
    %33 = memref.load %arg1[%c2_54, %c9_55] : memref<4x12xf32, #tpu.memory_space<smem>>
    %c2_56 = arith.constant 2 : index
    %c10_57 = arith.constant 10 : index
    %34 = memref.load %arg1[%c2_56, %c10_57] : memref<4x12xf32, #tpu.memory_space<smem>>
    %c2_58 = arith.constant 2 : index
    %c11_59 = arith.constant 11 : index
    %35 = memref.load %arg1[%c2_58, %c11_59] : memref<4x12xf32, #tpu.memory_space<smem>>
    %c3_60 = arith.constant 3 : index
    %c0_61 = arith.constant 0 : index
    %36 = memref.load %arg1[%c3_60, %c0_61] : memref<4x12xf32, #tpu.memory_space<smem>>
    %c3_62 = arith.constant 3 : index
    %c1_63 = arith.constant 1 : index
    %37 = memref.load %arg1[%c3_62, %c1_63] : memref<4x12xf32, #tpu.memory_space<smem>>
    %c3_64 = arith.constant 3 : index
    %c2_65 = arith.constant 2 : index
    %38 = memref.load %arg1[%c3_64, %c2_65] : memref<4x12xf32, #tpu.memory_space<smem>>
    %c3_66 = arith.constant 3 : index
    %c3_67 = arith.constant 3 : index
    %39 = memref.load %arg1[%c3_66, %c3_67] : memref<4x12xf32, #tpu.memory_space<smem>>
    %c3_68 = arith.constant 3 : index
    %c4_69 = arith.constant 4 : index
    %40 = memref.load %arg1[%c3_68, %c4_69] : memref<4x12xf32, #tpu.memory_space<smem>>
    %c3_70 = arith.constant 3 : index
    %c5_71 = arith.constant 5 : index
    %41 = memref.load %arg1[%c3_70, %c5_71] : memref<4x12xf32, #tpu.memory_space<smem>>
    %c3_72 = arith.constant 3 : index
    %c6_73 = arith.constant 6 : index
    %42 = memref.load %arg1[%c3_72, %c6_73] : memref<4x12xf32, #tpu.memory_space<smem>>
    %c3_74 = arith.constant 3 : index
    %c7_75 = arith.constant 7 : index
    %43 = memref.load %arg1[%c3_74, %c7_75] : memref<4x12xf32, #tpu.memory_space<smem>>
    %c3_76 = arith.constant 3 : index
    %c8_77 = arith.constant 8 : index
    %44 = memref.load %arg1[%c3_76, %c8_77] : memref<4x12xf32, #tpu.memory_space<smem>>
    %c3_78 = arith.constant 3 : index
    %c9_79 = arith.constant 9 : index
    %45 = memref.load %arg1[%c3_78, %c9_79] : memref<4x12xf32, #tpu.memory_space<smem>>
    %c3_80 = arith.constant 3 : index
    %c10_81 = arith.constant 10 : index
    %46 = memref.load %arg1[%c3_80, %c10_81] : memref<4x12xf32, #tpu.memory_space<smem>>
    %c3_82 = arith.constant 3 : index
    %c11_83 = arith.constant 11 : index
    %47 = memref.load %arg1[%c3_82, %c11_83] : memref<4x12xf32, #tpu.memory_space<smem>>
    %c0_84 = arith.constant 0 : index
    %48 = memref.load %arg2[%c0_84] : memref<3xf32, #tpu.memory_space<smem>>
    %c1_85 = arith.constant 1 : index
    %49 = memref.load %arg2[%c1_85] : memref<3xf32, #tpu.memory_space<smem>>
    %c2_86 = arith.constant 2 : index
    %50 = memref.load %arg2[%c2_86] : memref<3xf32, #tpu.memory_space<smem>>
    %c0_87 = arith.constant 0 : index
    %c0_88 = arith.constant 0 : index
    %51 = vector.load %arg3[%c0_87, %c0_88] : memref<8x128xf32, #tpu.memory_space<vmem>>, vector<8x128xf32>
    %c0_89 = arith.constant 0 : index
    %c0_90 = arith.constant 0 : index
    %52 = vector.load %arg4[%c0_89, %c0_90] : memref<8x128xf32, #tpu.memory_space<vmem>>, vector<8x128xf32>
    %53 = vector.broadcast %1 : f32 to vector<8x128xf32>
    %54 = arith.mulf %53, %51 : vector<8x128xf32>
    %55 = vector.broadcast %0 : f32 to vector<8x128xf32>
    %56 = arith.addf %55, %54 : vector<8x128xf32>
    %57 = vector.broadcast %2 : f32 to vector<8x128xf32>
    %58 = arith.mulf %57, %52 : vector<8x128xf32>
    %59 = arith.addf %56, %58 : vector<8x128xf32>
    %60 = vector.broadcast %13 : f32 to vector<8x128xf32>
    %61 = arith.mulf %60, %51 : vector<8x128xf32>
    %62 = vector.broadcast %12 : f32 to vector<8x128xf32>
    %63 = arith.addf %62, %61 : vector<8x128xf32>
    %64 = vector.broadcast %14 : f32 to vector<8x128xf32>
    %65 = arith.mulf %64, %52 : vector<8x128xf32>
    %66 = arith.addf %63, %65 : vector<8x128xf32>
    %67 = vector.broadcast %25 : f32 to vector<8x128xf32>
    %68 = arith.mulf %67, %51 : vector<8x128xf32>
    %69 = vector.broadcast %24 : f32 to vector<8x128xf32>
    %70 = arith.addf %69, %68 : vector<8x128xf32>
    %71 = vector.broadcast %26 : f32 to vector<8x128xf32>
    %72 = arith.mulf %71, %52 : vector<8x128xf32>
    %73 = arith.addf %70, %72 : vector<8x128xf32>
    %74 = vector.broadcast %37 : f32 to vector<8x128xf32>
    %75 = arith.mulf %74, %51 : vector<8x128xf32>
    %76 = vector.broadcast %36 : f32 to vector<8x128xf32>
    %77 = arith.addf %76, %75 : vector<8x128xf32>
    %78 = vector.broadcast %38 : f32 to vector<8x128xf32>
    %79 = arith.mulf %78, %52 : vector<8x128xf32>
    %80 = arith.addf %77, %79 : vector<8x128xf32>
    %81 = vector.broadcast %48 : f32 to vector<8x128xf32>
    %82 = arith.subf %52, %81 : vector<8x128xf32>
    %83 = arith.mulf %82, %82 : vector<8x128xf32>
    %84 = vector.broadcast %49 : f32 to vector<8x128xf32>
    %85 = arith.subf %52, %84 : vector<8x128xf32>
    %86 = arith.mulf %85, %85 : vector<8x128xf32>
    %87 = vector.broadcast %50 : f32 to vector<8x128xf32>
    %88 = arith.subf %52, %87 : vector<8x128xf32>
    %89 = arith.mulf %88, %88 : vector<8x128xf32>
    %90 = vector.broadcast %48 : f32 to vector<8x128xf32>
    %91 = arith.subf %51, %90 : vector<8x128xf32>
    %92 = arith.mulf %91, %91 : vector<8x128xf32>
    %93 = arith.addf %92, %83 : vector<8x128xf32>
    %cst = arith.constant 1.000000e-30 : f32
    %94 = vector.broadcast %cst : f32 to vector<8x128xf32>
    %95 = arith.maximumf %93, %94 : vector<8x128xf32>
    %96 = math.log %95 : vector<8x128xf32>
    %97 = arith.mulf %95, %96 : vector<8x128xf32>
    %98 = vector.broadcast %3 : f32 to vector<8x128xf32>
    %99 = arith.mulf %98, %97 : vector<8x128xf32>
    %100 = arith.addf %59, %99 : vector<8x128xf32>
    %101 = vector.broadcast %15 : f32 to vector<8x128xf32>
    %102 = arith.mulf %101, %97 : vector<8x128xf32>
    %103 = arith.addf %66, %102 : vector<8x128xf32>
    %104 = vector.broadcast %27 : f32 to vector<8x128xf32>
    %105 = arith.mulf %104, %97 : vector<8x128xf32>
    %106 = arith.addf %73, %105 : vector<8x128xf32>
    %107 = vector.broadcast %39 : f32 to vector<8x128xf32>
    %108 = arith.mulf %107, %97 : vector<8x128xf32>
    %109 = arith.addf %80, %108 : vector<8x128xf32>
    %110 = arith.addf %92, %86 : vector<8x128xf32>
    %cst_91 = arith.constant 1.000000e-30 : f32
    %111 = vector.broadcast %cst_91 : f32 to vector<8x128xf32>
    %112 = arith.maximumf %110, %111 : vector<8x128xf32>
    %113 = math.log %112 : vector<8x128xf32>
    %114 = arith.mulf %112, %113 : vector<8x128xf32>
    %115 = vector.broadcast %4 : f32 to vector<8x128xf32>
    %116 = arith.mulf %115, %114 : vector<8x128xf32>
    %117 = arith.addf %100, %116 : vector<8x128xf32>
    %118 = vector.broadcast %16 : f32 to vector<8x128xf32>
    %119 = arith.mulf %118, %114 : vector<8x128xf32>
    %120 = arith.addf %103, %119 : vector<8x128xf32>
    %121 = vector.broadcast %28 : f32 to vector<8x128xf32>
    %122 = arith.mulf %121, %114 : vector<8x128xf32>
    %123 = arith.addf %106, %122 : vector<8x128xf32>
    %124 = vector.broadcast %40 : f32 to vector<8x128xf32>
    %125 = arith.mulf %124, %114 : vector<8x128xf32>
    %126 = arith.addf %109, %125 : vector<8x128xf32>
    %127 = arith.addf %92, %89 : vector<8x128xf32>
    %cst_92 = arith.constant 1.000000e-30 : f32
    %128 = vector.broadcast %cst_92 : f32 to vector<8x128xf32>
    %129 = arith.maximumf %127, %128 : vector<8x128xf32>
    %130 = math.log %129 : vector<8x128xf32>
    %131 = arith.mulf %129, %130 : vector<8x128xf32>
    %132 = vector.broadcast %5 : f32 to vector<8x128xf32>
    %133 = arith.mulf %132, %131 : vector<8x128xf32>
    %134 = arith.addf %117, %133 : vector<8x128xf32>
    %135 = vector.broadcast %17 : f32 to vector<8x128xf32>
    %136 = arith.mulf %135, %131 : vector<8x128xf32>
    %137 = arith.addf %120, %136 : vector<8x128xf32>
    %138 = vector.broadcast %29 : f32 to vector<8x128xf32>
    %139 = arith.mulf %138, %131 : vector<8x128xf32>
    %140 = arith.addf %123, %139 : vector<8x128xf32>
    %141 = vector.broadcast %41 : f32 to vector<8x128xf32>
    %142 = arith.mulf %141, %131 : vector<8x128xf32>
    %143 = arith.addf %126, %142 : vector<8x128xf32>
    %144 = vector.broadcast %49 : f32 to vector<8x128xf32>
    %145 = arith.subf %51, %144 : vector<8x128xf32>
    %146 = arith.mulf %145, %145 : vector<8x128xf32>
    %147 = arith.addf %146, %83 : vector<8x128xf32>
    %cst_93 = arith.constant 1.000000e-30 : f32
    %148 = vector.broadcast %cst_93 : f32 to vector<8x128xf32>
    %149 = arith.maximumf %147, %148 : vector<8x128xf32>
    %150 = math.log %149 : vector<8x128xf32>
    %151 = arith.mulf %149, %150 : vector<8x128xf32>
    %152 = vector.broadcast %6 : f32 to vector<8x128xf32>
    %153 = arith.mulf %152, %151 : vector<8x128xf32>
    %154 = arith.addf %134, %153 : vector<8x128xf32>
    %155 = vector.broadcast %18 : f32 to vector<8x128xf32>
    %156 = arith.mulf %155, %151 : vector<8x128xf32>
    %157 = arith.addf %137, %156 : vector<8x128xf32>
    %158 = vector.broadcast %30 : f32 to vector<8x128xf32>
    %159 = arith.mulf %158, %151 : vector<8x128xf32>
    %160 = arith.addf %140, %159 : vector<8x128xf32>
    %161 = vector.broadcast %42 : f32 to vector<8x128xf32>
    %162 = arith.mulf %161, %151 : vector<8x128xf32>
    %163 = arith.addf %143, %162 : vector<8x128xf32>
    %164 = arith.addf %146, %86 : vector<8x128xf32>
    %cst_94 = arith.constant 1.000000e-30 : f32
    %165 = vector.broadcast %cst_94 : f32 to vector<8x128xf32>
    %166 = arith.maximumf %164, %165 : vector<8x128xf32>
    %167 = math.log %166 : vector<8x128xf32>
    %168 = arith.mulf %166, %167 : vector<8x128xf32>
    %169 = vector.broadcast %7 : f32 to vector<8x128xf32>
    %170 = arith.mulf %169, %168 : vector<8x128xf32>
    %171 = arith.addf %154, %170 : vector<8x128xf32>
    %172 = vector.broadcast %19 : f32 to vector<8x128xf32>
    %173 = arith.mulf %172, %168 : vector<8x128xf32>
    %174 = arith.addf %157, %173 : vector<8x128xf32>
    %175 = vector.broadcast %31 : f32 to vector<8x128xf32>
    %176 = arith.mulf %175, %168 : vector<8x128xf32>
    %177 = arith.addf %160, %176 : vector<8x128xf32>
    %178 = vector.broadcast %43 : f32 to vector<8x128xf32>
    %179 = arith.mulf %178, %168 : vector<8x128xf32>
    %180 = arith.addf %163, %179 : vector<8x128xf32>
    %181 = arith.addf %146, %89 : vector<8x128xf32>
    %cst_95 = arith.constant 1.000000e-30 : f32
    %182 = vector.broadcast %cst_95 : f32 to vector<8x128xf32>
    %183 = arith.maximumf %181, %182 : vector<8x128xf32>
    %184 = math.log %183 : vector<8x128xf32>
    %185 = arith.mulf %183, %184 : vector<8x128xf32>
    %186 = vector.broadcast %8 : f32 to vector<8x128xf32>
    %187 = arith.mulf %186, %185 : vector<8x128xf32>
    %188 = arith.addf %171, %187 : vector<8x128xf32>
    %189 = vector.broadcast %20 : f32 to vector<8x128xf32>
    %190 = arith.mulf %189, %185 : vector<8x128xf32>
    %191 = arith.addf %174, %190 : vector<8x128xf32>
    %192 = vector.broadcast %32 : f32 to vector<8x128xf32>
    %193 = arith.mulf %192, %185 : vector<8x128xf32>
    %194 = arith.addf %177, %193 : vector<8x128xf32>
    %195 = vector.broadcast %44 : f32 to vector<8x128xf32>
    %196 = arith.mulf %195, %185 : vector<8x128xf32>
    %197 = arith.addf %180, %196 : vector<8x128xf32>
    %198 = vector.broadcast %50 : f32 to vector<8x128xf32>
    %199 = arith.subf %51, %198 : vector<8x128xf32>
    %200 = arith.mulf %199, %199 : vector<8x128xf32>
    %201 = arith.addf %200, %83 : vector<8x128xf32>
    %cst_96 = arith.constant 1.000000e-30 : f32
    %202 = vector.broadcast %cst_96 : f32 to vector<8x128xf32>
    %203 = arith.maximumf %201, %202 : vector<8x128xf32>
    %204 = math.log %203 : vector<8x128xf32>
    %205 = arith.mulf %203, %204 : vector<8x128xf32>
    %206 = vector.broadcast %9 : f32 to vector<8x128xf32>
    %207 = arith.mulf %206, %205 : vector<8x128xf32>
    %208 = arith.addf %188, %207 : vector<8x128xf32>
    %209 = vector.broadcast %21 : f32 to vector<8x128xf32>
    %210 = arith.mulf %209, %205 : vector<8x128xf32>
    %211 = arith.addf %191, %210 : vector<8x128xf32>
    %212 = vector.broadcast %33 : f32 to vector<8x128xf32>
    %213 = arith.mulf %212, %205 : vector<8x128xf32>
    %214 = arith.addf %194, %213 : vector<8x128xf32>
    %215 = vector.broadcast %45 : f32 to vector<8x128xf32>
    %216 = arith.mulf %215, %205 : vector<8x128xf32>
    %217 = arith.addf %197, %216 : vector<8x128xf32>
    %218 = arith.addf %200, %86 : vector<8x128xf32>
    %cst_97 = arith.constant 1.000000e-30 : f32
    %219 = vector.broadcast %cst_97 : f32 to vector<8x128xf32>
    %220 = arith.maximumf %218, %219 : vector<8x128xf32>
    %221 = math.log %220 : vector<8x128xf32>
    %222 = arith.mulf %220, %221 : vector<8x128xf32>
    %223 = vector.broadcast %10 : f32 to vector<8x128xf32>
    %224 = arith.mulf %223, %222 : vector<8x128xf32>
    %225 = arith.addf %208, %224 : vector<8x128xf32>
    %226 = vector.broadcast %22 : f32 to vector<8x128xf32>
    %227 = arith.mulf %226, %222 : vector<8x128xf32>
    %228 = arith.addf %211, %227 : vector<8x128xf32>
    %229 = vector.broadcast %34 : f32 to vector<8x128xf32>
    %230 = arith.mulf %229, %222 : vector<8x128xf32>
    %231 = arith.addf %214, %230 : vector<8x128xf32>
    %232 = vector.broadcast %46 : f32 to vector<8x128xf32>
    %233 = arith.mulf %232, %222 : vector<8x128xf32>
    %234 = arith.addf %217, %233 : vector<8x128xf32>
    %235 = arith.addf %200, %89 : vector<8x128xf32>
    %cst_98 = arith.constant 1.000000e-30 : f32
    %236 = vector.broadcast %cst_98 : f32 to vector<8x128xf32>
    %237 = arith.maximumf %235, %236 : vector<8x128xf32>
    %238 = math.log %237 : vector<8x128xf32>
    %239 = arith.mulf %237, %238 : vector<8x128xf32>
    %240 = vector.broadcast %11 : f32 to vector<8x128xf32>
    %241 = arith.mulf %240, %239 : vector<8x128xf32>
    %242 = arith.addf %225, %241 : vector<8x128xf32>
    %243 = vector.broadcast %23 : f32 to vector<8x128xf32>
    %244 = arith.mulf %243, %239 : vector<8x128xf32>
    %245 = arith.addf %228, %244 : vector<8x128xf32>
    %246 = vector.broadcast %35 : f32 to vector<8x128xf32>
    %247 = arith.mulf %246, %239 : vector<8x128xf32>
    %248 = arith.addf %231, %247 : vector<8x128xf32>
    %249 = vector.broadcast %47 : f32 to vector<8x128xf32>
    %250 = arith.mulf %249, %239 : vector<8x128xf32>
    %251 = arith.addf %234, %250 : vector<8x128xf32>
    %c0_99 = arith.constant 0 : index
    %c0_100 = arith.constant 0 : index
    %c0_101 = arith.constant 0 : index
    %252 = vector.load %arg5[%c0_99, %c0_100, %c0_101] : memref<2x128x256xf32, #tpu.memory_space<vmem>>, vector<1x128x256xf32>
    %253 = vector.shape_cast %252 : vector<1x128x256xf32> to vector<128x256xf32>
    %cst_102 = arith.constant dense<0.000000e+00> : vector<8x256xf32>
    %254 = tpu.matmul %242, %253, %cst_102 {dimension_numbers = #tpu.dot_dimension_numbers<[1], [0], [0], [1], [0, 0, 1, 1], [], []>, precision = #tpu.contract_precision<fp32>} : vector<8x128xf32>, vector<128x256xf32>, vector<8x256xf32> -> vector<8x256xf32>
    %c1_103 = arith.constant 1 : index
    %c0_104 = arith.constant 0 : index
    %c0_105 = arith.constant 0 : index
    %255 = vector.load %arg5[%c1_103, %c0_104, %c0_105] : memref<2x128x256xf32, #tpu.memory_space<vmem>>, vector<1x128x256xf32>
    %256 = vector.shape_cast %255 : vector<1x128x256xf32> to vector<128x256xf32>
    %cst_106 = arith.constant dense<0.000000e+00> : vector<8x256xf32>
    %257 = tpu.matmul %245, %256, %cst_106 {dimension_numbers = #tpu.dot_dimension_numbers<[1], [0], [0], [1], [0, 0, 1, 1], [], []>, precision = #tpu.contract_precision<fp32>} : vector<8x128xf32>, vector<128x256xf32>, vector<8x256xf32> -> vector<8x256xf32>
    %258 = arith.addf %254, %257 : vector<8x256xf32>
    %c0_107 = arith.constant 0 : index
    %c0_108 = arith.constant 0 : index
    %c0_109 = arith.constant 0 : index
    %259 = vector.load %arg6[%c0_107, %c0_108, %c0_109] : memref<2x8x256xf32, #tpu.memory_space<vmem>>, vector<1x8x256xf32>
    %260 = vector.shape_cast %259 : vector<1x8x256xf32> to vector<8x256xf32>
    %261 = vector.shape_cast %258 : vector<8x256xf32> to vector<1x8x256xf32>
    tpu.vector_store %arg6[%c0_107, %c0_108, %c0_109], %261 {strides = array<i32>} : memref<2x8x256xf32, #tpu.memory_space<vmem>>, vector<1x8x256xf32>,
    %c0_110 = arith.constant 0 : index
    %c0_111 = arith.constant 0 : index
    %c0_112 = arith.constant 0 : index
    %262 = vector.load %arg5[%c0_110, %c0_111, %c0_112] : memref<2x128x256xf32, #tpu.memory_space<vmem>>, vector<1x128x256xf32>
    %263 = vector.shape_cast %262 : vector<1x128x256xf32> to vector<128x256xf32>
    %cst_113 = arith.constant dense<0.000000e+00> : vector<8x256xf32>
    %264 = tpu.matmul %248, %263, %cst_113 {dimension_numbers = #tpu.dot_dimension_numbers<[1], [0], [0], [1], [0, 0, 1, 1], [], []>, precision = #tpu.contract_precision<fp32>} : vector<8x128xf32>, vector<128x256xf32>, vector<8x256xf32> -> vector<8x256xf32>
    %c1_114 = arith.constant 1 : index
    %c0_115 = arith.constant 0 : index
    %c0_116 = arith.constant 0 : index
    %265 = vector.load %arg5[%c1_114, %c0_115, %c0_116] : memref<2x128x256xf32, #tpu.memory_space<vmem>>, vector<1x128x256xf32>
    %266 = vector.shape_cast %265 : vector<1x128x256xf32> to vector<128x256xf32>
    %cst_117 = arith.constant dense<0.000000e+00> : vector<8x256xf32>
    %267 = tpu.matmul %251, %266, %cst_117 {dimension_numbers = #tpu.dot_dimension_numbers<[1], [0], [0], [1], [0, 0, 1, 1], [], []>, precision = #tpu.contract_precision<fp32>} : vector<8x128xf32>, vector<128x256xf32>, vector<8x256xf32> -> vector<8x256xf32>
    %268 = arith.addf %264, %267 : vector<8x256xf32>
    %c1_118 = arith.constant 1 : index
    %c0_119 = arith.constant 0 : index
    %c0_120 = arith.constant 0 : index
    %269 = vector.load %arg6[%c1_118, %c0_119, %c0_120] : memref<2x8x256xf32, #tpu.memory_space<vmem>>, vector<1x8x256xf32>
    %270 = vector.shape_cast %269 : vector<1x8x256xf32> to vector<8x256xf32>
    %271 = vector.shape_cast %268 : vector<8x256xf32> to vector<1x8x256xf32>
    tpu.vector_store %arg6[%c1_118, %c0_119, %c0_120], %271 {strides = array<i32>} : memref<2x8x256xf32, #tpu.memory_space<vmem>>, vector<1x8x256xf32>,
    return
  }
  func.func @transform_0(%arg0: i32) -> (i32, i32) {
    %c0_i32 = arith.constant 0 : i32
    %c0_i32_0 = arith.constant 0 : i32
    %c0_i32_1 = arith.constant 0 : i32
    return %c0_i32, %c0_i32_0 : i32, i32
  }
  func.func @transform_1(%arg0: i32) -> i32 {
    %c0_i32 = arith.constant 0 : i32
    %c0_i32_0 = arith.constant 0 : i32
    return %c0_i32 : i32
  }
  func.func @transform_2(%arg0: i32) -> (i32, i32) {
    %c0_i32 = arith.constant 0 : i32
    %c0_i32_0 = arith.constant 0 : i32
    return %arg0, %c0_i32 : i32, i32
  }
  func.func @transform_3(%arg0: i32) -> (i32, i32) {
    %c0_i32 = arith.constant 0 : i32
    %c0_i32_0 = arith.constant 0 : i32
    return %arg0, %c0_i32 : i32, i32
  }
  func.func @transform_4(%arg0: i32) -> (i32, i32, i32) {
    %c0_i32 = arith.constant 0 : i32
    %c0_i32_0 = arith.constant 0 : i32
    %c0_i32_1 = arith.constant 0 : i32
    %c0_i32_2 = arith.constant 0 : i32
    return %c0_i32, %c0_i32_0, %c0_i32_1 : i32, i32, i32
  }
  func.func @transform_5(%arg0: i32) -> (i32, i32, i32) {
    %c0_i32 = arith.constant 0 : i32
    %c0_i32_0 = arith.constant 0 : i32
    %c0_i32_1 = arith.constant 0 : i32
    return %c0_i32, %arg0, %c0_i32_0 : i32, i32, i32
  }
}

</mosaic_0001>

<bundles_post_ra>
// kernel: tpu_custom_call.1
= control target key start
LH: loop header
LB: loop body
LE: loop exit
PB: predicated region body
PF: predicated region fallthrough
CT: control target
= control target key end

     0   :  { %s7190_s0 = inlined_call_operand.hbm [shape: f32[4,12], index: 0, kind: input, shape index: {}]   ;;  %s7191_s1 = inlined_call_operand.vmem [shape: f32[3], index: 1, kind: input, shape index: {}]   ;;  %s7192_s2 = inlined_call_operand.hbm [shape: f32[16,128], index: 2, kind: input, shape index: {}]   ;;  %s7193_s3 = inlined_call_operand.hbm [shape: f32[16,128], index: 3, kind: input, shape index: {}]   ;;  %s7194_s4 = inlined_call_operand.hbm [shape: f32[2,128,256], index: 4, kind: input, shape index: {}]   ;;  %s7195_s5 = inlined_call_operand.hbm [shape: f32[2,16,256], index: 5, kind: output, shape index: {}]  }
   0x1   :  { %7355 = sst [smem:[#allocation57_spill]] %s7190_s0 }
   0x2   :  { %7356 = sst [smem:[#allocation58_spill]] %s7191_s1 }
   0x3   :  { %7357 = sst [smem:[#allocation59_spill]] %s7192_s2 }
   0x4   :  { %7358 = sst [smem:[#allocation60_spill]] %s7193_s3 }
   0x5   :  { %7359 = sst [smem:[#allocation61_spill]] %s7194_s4 }
   0x6   :  { %10 = vsyncpa [#allocation5], 0 }
   0x7   :  { %11 = vsyncpa [#allocation6], 0 }
   0x8   :  { %12 = vsyncpa [#allocation3], 0 }
   0x9   :  { %14 = vsyncpa [#allocation3 + $0x1], 0 }
   0xa   :  { %15 = vsyncpa [#allocation10], 0 }
   0xb   :  { %17 = vsyncpa [#allocation10 + $0x1], 0 }
   0xc   :  { %18 = vsyncpa [#allocation4], 0 }
   0xd   :  { %20 = vsyncpa [#allocation4 + $0x1], 0  ;;  %s5496_s18 = smov 0   ;;  %s5498_s19 = smov 0  }
   0xe   :  { %s5500_s20 = smov 0   ;;  %s5502_s21 = smov 0  }
   0xf LB: > { %s5517_s22 = sadd.s32 4294967295, %s5452_s21   ;;  %s4262_s23 = sadd.s32 4294967294, %s5452_s21   ;;  %s5452_s21 = sphi %s5502_s21, %s7621_s21   ;;  %s5448_s20 = sphi %s5500_s20, %s7620_s20   ;;  %s5444_s19 = sphi %s5498_s19, %s7619_s19   ;;  %s5440_s18 = sphi %s5496_s18, %s7618_s18  }
  0x10   : > { %p88_p0 = scmp.ne.s32.totalorder %s5444_s19, %s5440_s18  ;;  %p7196_p1 = scmp.eq.s32.totalorder %s5517_s22, 0 }
  0x11   : > { %p165_p3 = scmp.eq.s32.totalorder %s4262_s23, 1  ;;  %p4263_p5 = scmp.ge.s32.totalorder %s5452_s21, 1 }
  0x12   : > { %p5526_p4 = por %p7196_p1, %p88_p0  ;;  %p172_p7 = scmp.lt.s32.totalorder %s5452_s21, 3 }
  0x13   : > { %p5531_p6 = por %p165_p3, %p88_p0  ;;  %s5454_s27 = smov [#allocation11]  }
  0x14   : > { %s7360_s24 = scalar_select %p5526_p4, 1, 0 }
  0x15   : > { %s7361_s25 = scalar_select %p5531_p6, 1, 0 }
  0x16   : > { %p5536_p8 = pnand %p4263_p5, %p172_p7  ;;  %s204_s28 = sshll.u32 %s5454_s27, 4  ;;  %s205_s28 = int_to_ptr.vmem [resolvable:$true] %s204_s28 }
  0x17   : > { %s7364_s1 = sld [smem:[#allocation58_spill]]  ;;  %s7365_s4 = sld [smem:[#allocation61_spill]] }
  0x18   : > { %s7362_s26 = scalar_select %p5536_p8, 1, 0 }
  0x19   : > { %p5166_p9 = pneg %p5536_p8 }
  0x1b   : > { %p5545_p11 = pnand %p5166_p9, %p7196_p1 }
  0x1d   : > { %s194_s7 = sshll.u32 %s7364_s1, 4  ;;  %s5254_s10 = scalar_lea.hbm %s7365_s4, 8192  ;;  %s5552_s7 = int_to_ptr.vmem [resolvable:$true] %s194_s7 }
  0x1e   : > { %p5255_p12 = scmp.ne.s32.totalorder %s7365_s4, %s5254_s10  ;;  %p5256_p13 = pneg %p5545_p11 }
  0x1f   : > { %p5261_p5 = scmp.lt.u32.totalorder %s5254_s10, %s7365_s4 }
  0x20   : > { %p5257_p0 = pnand %p5256_p13, %p5255_p12 }
  0x22   : > { %p5258_p3 = pneg %p5257_p0 }
  0x24   : > { %p5263_p7 = pnand %p5261_p5, %p5258_p3 }
  0x26   : > { %5266 = shalt.err (!%p5263_p7)
}
  0x27   : > { %s5267_s15 = scalar_lea.vmem %s205_s28, 8192  ;;  %p5275_p2 = scmp.lt.s32.totalorder %s205_s28, %s205_s28 }
  0x28   : > { %p5268_p9 = scmp.ne.s32.totalorder %s205_s28, %s5267_s15  ;;  %p5276_p6 = scmp.lt.s32.totalorder %s5267_s15, %s5267_s15 }
  0x2a   : > { %p5270_p10 = pnand %p5268_p9, %p5256_p13  ;;  %p5277_p4 = por %p5276_p6, %p5275_p2 }
  0x2c   : > { %p5271_p1 = pneg %p5270_p10 }
  0x2e   : > { %p5278_p8 = pnand %p5277_p4, %p5271_p1 }
  0x30   : > { %5281 = shalt.err (!%p5278_p8)
}
  0x31   : > { %s5455_s16 = smov 256   ;;  %s5456_s17 = smov 16  }
  0x32   : > { %5175 = dma.hbm_to_vmem [thread:$0]  (!%p5545_p11), %s7365_s4, 8192, %s205_s28, [#allocation10], %s5455_s16, %s5455_s16, %s5456_s17  }
  0x33   : > { %s7366_s0 = sld [smem:[#allocation57_spill]] }
  0x39   : > { %s5282_s8 = scalar_lea.hbm %s7366_s0, 64 }
  0x3a   : > { %p5283_p10 = scmp.ne.s32.totalorder %s7366_s0, %s5282_s8  ;;  %p5289_p4 = scmp.lt.u32.totalorder %s5282_s8, %s7366_s0 }
  0x3c   : > { %p5285_p1 = pnand %p5283_p10, %p5256_p13 }
  0x3e   : > { %p5286_p2 = pneg %p5285_p1 }
  0x40   : > { %p5291_p6 = pnand %p5289_p4, %p5286_p2 }
  0x42   : > { %5294 = shalt.err (!%p5291_p6)
}
  0x43   : > { %s5457_s13 = smov [#allocation2]   ;;  %s5295_s15 = scalar_lea.vmem %s5552_s7, 16 }
  0x44   : > { %5169 = dma.hbm_to_smem (!%p5545_p11), %s7366_s0, 64, %s5457_s13, [#allocation5]  }
  0x45   : > { %p5296_p8 = scmp.ne.s32.totalorder %s5552_s7, %s5295_s15  ;;  %p5303_p3 = scmp.lt.s32.totalorder %s5552_s7, %s5552_s7 }
  0x46   : > { %p5304_p5 = scmp.lt.s32.totalorder %s5295_s15, %s5295_s15 }
  0x47   : > { %p5298_p12 = pnand %p5296_p8, %p5256_p13 }
  0x48   : > { %p5305_p7 = por %p5304_p5, %p5303_p3 }
  0x49   : > { %p5299_p0 = pneg %p5298_p12 }
  0x4b   : > { %p5306_p9 = pnand %p5305_p7, %p5299_p0 }
  0x4d   : > { %5309 = shalt.err (!%p5306_p9)
}
  0x4e   : > { %s5458_s16 = smov [#allocation7]   ;;  %s5604_s17 = sadd.s32 1, %s5452_s21  }
  0x4f   : > { %5172 = dma.vmem_to_smem (!%p5545_p11), %s5552_s7, 16, %s5458_s16, [#allocation6]  }
  0x50   : > { %s72_s23 = ssub.s32 %s5452_s21, %s5604_s17  ;;  %s75_s27 = sadd.s32 1, %s5448_s20 }
  0x51   : > { %p73_p13 = scmp.eq.s32.totalorder %s72_s23, 0  ;;  %p82_p10 = scmp.ne.s32.totalorder %s5448_s20, %s5444_s19 }
  0x52   : > { %p83_p1 = scmp.eq.s32.totalorder %s5452_s21, 0  ;;  %p5190_p2 = scmp.lt.s32.totalorder %s5452_s21, 2 }
  0x53   : > { %s5614_s29 = scalar_select %p73_p13, %s5448_s20, %s75_s27  }
  0x54   : > { %p84_p4 = por %p83_p1, %p82_p10  ;;  %p7368_p6 = scmp.eq.s32.totalorder %s5517_s22, 1 }
  0x55   : > { %7367 = sst [smem:[#allocation19_spill]] %s5614_s29  ;;  %s218_s6 = sand.u32 1, %s5448_s20  }
  0x56   : > { %p5618_p8 = por %p7368_p6, %p82_p10  ;;  %s4269_s8 = sshll.u32 %s5452_s21, 7 }
  0x57   : > { %s5624_s7 = sshll.u32 %s218_s6, 3  ;;  %s7370_s2 = sld [smem:[#allocation59_spill]] }
  0x58   : > { %s7369_s30 = scalar_select %p5618_p8, 1, 0 }
  0x59   : > { %s222_s12 = scalar_lea.vmem [#allocation8], %s5624_s7  ;;  %p5632_p11 = pnand %p5190_p2, %p84_p4 }
  0x5a   : > { %s229_s13 = sshll.u32 %s222_s12, 4  ;;  %s7372_s3 = sld [smem:[#allocation60_spill]]  ;;  %s5636_s13 = int_to_ptr.vmem [resolvable:$true] %s229_s13 }
  0x5b   : > { %s219_s23 = scalar_lea.sflag [#allocation3], %s218_s6  ;;  %p5312_p0 = pneg %p5632_p11 }
  0x5d   : > { %s5629_s11 = scalar_lea.hbm %s7370_s2, %s4269_s8  ;;  %s5315_s12 = scalar_lea.hbm %s7370_s2, 256 }
  0x5e   : > { %s5310_s27 = scalar_lea.hbm %s5629_s11, 128  ;;  %p5316_p7 = scmp.lt.u32.totalorder %s5629_s11, %s7370_s2 }
  0x5f   : > { %p5311_p12 = scmp.ne.s32.totalorder %s5629_s11, %s5310_s27  ;;  %p5317_p9 = scmp.lt.u32.totalorder %s5315_s12, %s5310_s27 }
  0x60   : > { %s5641_s16 = scalar_lea.hbm %s7372_s3, %s4269_s8  ;;  %p5319_p10 = scmp.lt.u32.totalorder %s5310_s27, %s5629_s11 }
  0x61   : > { %p5313_p3 = pnand %p5312_p0, %p5311_p12  ;;  %p5318_p13 = por %p5317_p9, %p5316_p7 }
  0x63   : > { %p5314_p5 = pneg %p5313_p3  ;;  %p5320_p1 = por %p5319_p10, %p5318_p13 }
  0x65   : > { %p5321_p2 = pnand %p5320_p1, %p5314_p5 }
  0x67   : > { %5324 = shalt.err (!%p5321_p2)
}
  0x68   : > { %s5325_s6 = scalar_lea.vmem %s5636_s13, 128  ;;  %s5459_s8 = smov [#allocation8]  }
  0x69   : > { %p5326_p4 = scmp.ne.s32.totalorder %s5636_s13, %s5325_s6  ;;  %s5330_s14 = sshll.u32 %s5459_s8, 4  ;;  %s5331_s14 = int_to_ptr.vmem [resolvable:$false] %s5330_s14 }
  0x6a   : > { %s5332_s0 = scalar_lea.vmem %s5331_s14, 256  ;;  %p5333_p3 = scmp.lt.s32.totalorder %s5636_s13, %s5331_s14 }
  0x6b   : > { %p5328_p6 = pnand %p5326_p4, %p5312_p0  ;;  %p5334_p7 = scmp.lt.s32.totalorder %s5332_s0, %s5325_s6 }
  0x6d   : > { %p5329_p12 = pneg %p5328_p6  ;;  %p5335_p9 = por %p5334_p7, %p5333_p3 }
  0x6f   : > { %p5336_p13 = pnand %p5335_p9, %p5329_p12 }
  0x71   : > { %5339 = shalt.err (!%p5336_p13)
}
  0x72   : > { %5179 = dma.hbm_to_vmem [thread:$0]  (!%p5632_p11), %s5629_s11, 128, %s5636_s13, %s219_s23  }
  0x73   : > { %s236_s1 = sand.u32 1, %s5452_s21   ;;  %s240_s15 = scalar_lea.vmem [#allocation9], %s5624_s7 }
  0x74   : > { %s247_s27 = sshll.u32 %s240_s15, 4  ;;  %s237_s9 = scalar_lea.sflag [#allocation10], %s236_s1  ;;  %s248_s27 = int_to_ptr.vmem [resolvable:$true] %s247_s27 }
  0x75   : > { %s5340_s10 = scalar_lea.hbm %s5641_s16, 128  ;;  %s5345_s8 = scalar_lea.hbm %s7372_s3, 256 }
  0x76   : > { %p5341_p5 = scmp.ne.s32.totalorder %s5641_s16, %s5340_s10  ;;  %p5346_p2 = scmp.lt.u32.totalorder %s5641_s16, %s7372_s3 }
  0x77   : > { %p5347_p4 = scmp.lt.u32.totalorder %s5345_s8, %s5340_s10  ;;  %p5349_p12 = scmp.lt.u32.totalorder %s5340_s10, %s5641_s16 }
  0x78   : > { %p5343_p10 = pnand %p5341_p5, %p5312_p0 }
  0x79   : > { %p5348_p6 = por %p5347_p4, %p5346_p2 }
  0x7a   : > { %p5344_p1 = pneg %p5343_p10 }
  0x7b   : > { %p5350_p3 = por %p5349_p12, %p5348_p6 }
  0x7d   : > { %p5351_p7 = pnand %p5350_p3, %p5344_p1 }
  0x7f   : > { %5354 = shalt.err (!%p5351_p7)
}
  0x80   : > { %s5355_s7 = scalar_lea.vmem %s248_s27, 128  ;;  %s5460_s11 = smov [#allocation9]  }
  0x81   : > { %p5356_p9 = scmp.ne.s32.totalorder %s248_s27, %s5355_s7  ;;  %s5360_s13 = sshll.u32 %s5460_s11, 4  ;;  %s5361_s13 = int_to_ptr.vmem [resolvable:$false] %s5360_s13 }
  0x82   : > { %s5362_s23 = scalar_lea.vmem %s5361_s13, 256  ;;  %p5363_p10 = scmp.lt.s32.totalorder %s248_s27, %s5361_s13 }
  0x83   : > { %p5358_p13 = pnand %p5356_p9, %p5312_p0  ;;  %p5364_p8 = scmp.lt.s32.totalorder %s5362_s23, %s5355_s7 }
  0x85   : > { %p5359_p5 = pneg %p5358_p13  ;;  %p5365_p2 = por %p5364_p8, %p5363_p10 }
  0x87   : > { %p5366_p4 = pnand %p5365_p2, %p5359_p5 }
  0x89   : > { %5369 = shalt.err (!%p5366_p4)
}
  0x8a   : > { %5182 = dma.hbm_to_vmem [thread:$0]  (!%p5632_p11), %s5641_s16, 128, %s248_s27, %s237_s9  }
  0x8b   : > { %p7373_p1 = scmp.ne.s32.totalorder %s7362_s26, 0 }
  0x8d   : > { %256 = sbr.rel (%p7373_p1) target bundleno = 832 (0x340), region = 40 }
  0x94   : > { %p7374_p6 = scmp.eq.s32.totalorder %s5517_s22, 0 }
  0x96   : > { %5415 = dma.done.wait (%p7374_p6), [#allocation5], 64   ;;  %p7375_p0 = pmov %p7374_p6 }
  0x98   : > { %5417 = vsyncadd (%p7375_p0), [#allocation5], 4294967232  ;;  %p7376_p12 = pmov %p7375_p0 }
  0x99   : > { %p7377_p8 = pmov %p7375_p0 }
  0x9a   : > { %5419 = dma.done.wait (%p7376_p12), [#allocation6], 16  }
  0x9b   : > { %5421 = vsyncadd (%p7377_p8), [#allocation6], 4294967280  ;;  %s5700_s28 = sand.u32 1, %s5444_s19   ;;  %p7378_p11 = scmp.ne.s32.totalorder %s7360_s24, 0 }
  0x9c   : > { %s4275_s26 = sshll.u32 %s5700_s28, 3  ;;  %s267_s16 = scalar_lea.sflag [#allocation3], %s5700_s28 }
  0x9d   : > { %s5704_s1 = scalar_lea.vmem [#allocation8], %s4275_s26 }
  0x9e   : > { %5423 = dma.done.wait (%p7378_p11), %s267_s16, 128  }
  0x9f   : > { %5425 = vsyncadd (%p7378_p11), %s267_s16, 4294967168  ;;  %s275_s15 = sand.u32 1, %s5517_s22   ;;  %s5711_s9 = scalar_lea.vmem [#allocation9], %s4275_s26 }
  0xa0   : > { %s276_s27 = scalar_lea.sflag [#allocation10], %s275_s15 }
  0xa1   : > { %5427 = dma.done.wait (%p7378_p11), %s276_s27, 128  }
  0xa2   : > { %5429 = vsyncadd (%p7378_p11), %s276_s27, 4294967168  ;;  %p7379_p3 = pmov %p7375_p0 }
  0xa3   : > { %p7380_p7 = pmov %p7375_p0 }
  0xa4   : > { %5431 = dma.done.wait (%p7379_p3), [#allocation10], 8192  }
  0xa5   : > { %5433 = vsyncadd (%p7380_p7), [#allocation10], 4294959104 }
  0xa6   : > { %288 = sfence }
  0xa7   : > { %v599_v0 = vld [vmem:[#allocation11 + $0x108] sm:$0xff]  ;;  %v601_v1 = vld [vmem:[#allocation11 + $0x118] sm:$0xff]  ;;  %v598_v2 = vld [vmem:[#allocation11 + $0x100] sm:$0xff]  ;;  %v7202_v9 = vmov 0.0   ;;  %s5783_s24 = sld [smem:[#allocation2 + $0x81]]  ;;  %s5793_s10 = sld [smem:[#allocation2 + $0x80]] }
  0xa8   : > { %v630_v3 = vand.u32 4294901760, %v599_v0  ;;  %v634_v4 = vand.u32 4294901760, %v601_v1  ;;  %v600_v5 = vld [vmem:[#allocation11 + $0x110] sm:$0xff]  ;;  %v632_v6 = vand.u32 4294901760, %v598_v2  ;;  %v603_v7 = vld [vmem:[#allocation11 + $0x128] sm:$0xff]  ;;  %v605_v8 = vld [vmem:[#allocation11 + $0x138] sm:$0xff]  ;;  %726 = vmatprep.mubr.f32.mxu0 %v7202_v9  ;;  %2502 = vmatprep.mubr.f32.mxu1 %v7202_v9 }
  0xa9   : > { %v636_v10 = vand.u32 4294901760, %v600_v5  ;;  %v638_v11 = vand.u32 4294901760, %v603_v7  ;;  %v642_v12 = vand.u32 4294901760, %v605_v8  ;;  %v602_v13 = vld [vmem:[#allocation11 + $0x120] sm:$0xff]  ;;  %v604_v14 = vld [vmem:[#allocation11 + $0x130] sm:$0xff]  ;;  %v607_v15 = vld [vmem:[#allocation11 + $0x148] sm:$0xff] }
  0xaa   : > { %v5723_v16 = vpack.c.bf16 %v634_v4, %v630_v3  ;;  %v5725_v17 = vsub.f32 %v599_v0, %v630_v3  ;;  %v5727_v18 = vsub.f32 %v601_v1, %v634_v4  ;;  %v5729_v19 = vsub.f32 %v598_v2, %v632_v6  ;;  %v609_v20 = vld [vmem:[#allocation11 + $0x158] sm:$0xff]  ;;  %v606_v21 = vld [vmem:[#allocation11 + $0x140] sm:$0xff]  ;;  %v608_v22 = vld [vmem:[#allocation11 + $0x150] sm:$0xff]  ;;  %s5795_s12 = sld [smem:[#allocation2 + $0x82]]  ;;  %s5803_s6 = sld [smem:[#allocation7]] }
  0xab   : > { %v5731_v23 = vpack.c.bf16 %v636_v10, %v632_v6  ;;  %v5733_v24 = vsub.f32 %v600_v5, %v636_v10  ;;  %v5735_v25 = vpack.c.bf16 %v642_v12, %v638_v11  ;;  %v5737_v26 = vsub.f32 %v603_v7, %v638_v11  ;;  %v611_v27 = vld [vmem:[#allocation11 + $0x168] sm:$0xff]  ;;  %v613_v28 = vld [vmem:[#allocation11 + $0x178] sm:$0xff]  ;;  %v610_v37 = vld [vmem:[#allocation11 + $0x160] sm:$0xff]  ;;  %s5807_s8 = sld [smem:[#allocation7 + $0x1]]  ;;  %s5823_s14 = sld [smem:[#allocation7 + $0x2]] }
  0xac   : > { %7381 = vst [vmem:[#allocation20_spill] sm:$0xff] %v5723_v16  ;;  %7382 = vst [vmem:[#allocation21_spill] sm:$0xff] %v5725_v17  ;;  %4337 = vmatprep.subr.bf16.mxu0 %v5723_v16  ;;  %4721 = vmatprep.subr.bf16.mxu1 %v5723_v16  ;;  %v5741_v29 = vsub.f32 %v605_v8, %v642_v12  ;;  %v640_v30 = vand.u32 4294901760, %v602_v13  ;;  %v644_v31 = vand.u32 4294901760, %v604_v14  ;;  %v646_v32 = vand.u32 4294901760, %v607_v15  ;;  %v612_v42 = vld [vmem:[#allocation11 + $0x170] sm:$0xff] }
  0xad   : > { %7383 = vst [vmem:[#allocation22_spill] sm:$0xff] %v5727_v18  ;;  %7384 = vst [vmem:[#allocation23_spill] sm:$0xff] %v5729_v19  ;;  %4339 = vmatpush1.bf16.msra.mxu0 %v5731_v23  ;;  %4723 = vmatpush1.bf16.msra.mxu1 %v5731_v23  ;;  %v650_v33 = vand.u32 4294901760, %v609_v20  ;;  %v648_v34 = vand.u32 4294901760, %v606_v21  ;;  %v652_v35 = vand.u32 4294901760, %v608_v22  ;;  %v654_v36 = vand.u32 4294901760, %v611_v27 }
  0xae   : > { %7385 = vst [vmem:[#allocation24_spill] sm:$0xff] %v5731_v23  ;;  %7386 = vst [vmem:[#allocation25_spill] sm:$0xff] %v5733_v24  ;;  %4341 = vmatprep.subr.bf16.mxu0 %v5735_v25  ;;  %4725 = vmatprep.subr.bf16.mxu1 %v5735_v25  ;;  %v5747_v38 = vpack.c.bf16 %v644_v31, %v640_v30  ;;  %v5749_v39 = vsub.f32 %v602_v13, %v640_v30  ;;  %v658_v41 = vand.u32 4294901760, %v613_v28  ;;  %v615_v43 = vld [vmem:[#allocation11 + $0x188] sm:$0xff]  ;;  %v617_v44 = vld [vmem:[#allocation11 + $0x198] sm:$0xff]  ;;  %s5833_s0 = sld [smem:[#allocation2 + $0x83]] }
  0xaf   : > { %7387 = vst [vmem:[#allocation26_spill] sm:$0xff] %v5735_v25  ;;  %7388 = vst [vmem:[#allocation27_spill] sm:$0xff] %v5737_v26  ;;  %v5751_v40 = vsub.f32 %v604_v14, %v644_v31  ;;  %v5753_v45 = vpack.c.bf16 %v650_v33, %v646_v32  ;;  %v5755_v46 = vsub.f32 %v607_v15, %v646_v32  ;;  %v614_v49 = vld [vmem:[#allocation11 + $0x180] sm:$0xff]  ;;  %v616_v50 = vld [vmem:[#allocation11 + $0x190] sm:$0xff]  ;;  %v656_v57 = vand.u32 4294901760, %v610_v37  ;;  %s5839_s7 = sld [smem:[#allocation2 + $0x84]] }
  0xb0   : > { %7389 = vst [vmem:[#allocation28_spill] sm:$0xff] %v5741_v29  ;;  %7390 = vst [vmem:[#allocation29_spill] sm:$0xff] %v5747_v38  ;;  %v5757_v47 = vsub.f32 %v609_v20, %v650_v33  ;;  %v5759_v48 = vpack.c.bf16 %v652_v35, %v648_v34  ;;  %v619_v51 = vld [vmem:[#allocation11 + $0x1a8] sm:$0xff]  ;;  %v5761_v52 = vsub.f32 %v606_v21, %v648_v34  ;;  %v660_v58 = vand.u32 4294901760, %v612_v42  ;;  %v621_v60 = vld [vmem:[#allocation11 + $0x1b8] sm:$0xff]  ;;  %s5845_s11 = sld [smem:[#allocation2 + $0x85]] }
  0xb1   : > { %7391 = vst [vmem:[#allocation30_spill] sm:$0xff] %v5749_v39  ;;  %7392 = vst [vmem:[#allocation31_spill] sm:$0xff] %v5751_v40  ;;  %v5763_v53 = vsub.f32 %v608_v22, %v652_v35  ;;  %v5765_v54 = vpack.c.bf16 %v658_v41, %v654_v36  ;;  %v5767_v55 = vsub.f32 %v611_v27, %v654_v36  ;;  %4343 = vmatpush1.bf16.msra.mxu0 %v5747_v38  ;;  %v618_v1 = vld [vmem:[#allocation11 + $0x1a0] sm:$0xff]  ;;  %v620_v2 = vld [vmem:[#allocation11 + $0x1b0] sm:$0xff]  ;;  %s5847_s13 = sld [smem:[#allocation2 + $0x86]]  ;;  %s5858_s23 = sld [smem:[#allocation2 + $0x87]] }
  0xb2   : > { %7393 = vst [vmem:[#allocation32_spill] sm:$0xff] %v5753_v45  ;;  %7394 = vst [vmem:[#allocation33_spill] sm:$0xff] %v5759_v48  ;;  %4727 = vmatpush1.bf16.msra.mxu1 %v5747_v38  ;;  %v5771_v56 = vsub.f32 %v613_v28, %v658_v41  ;;  %v662_v59 = vand.u32 4294901760, %v615_v43  ;;  %4345 = vmatprep.subr.bf16.mxu0 %v5753_v45  ;;  %v666_v61 = vand.u32 4294901760, %v617_v44  ;;  %v664_v62 = vand.u32 4294901760, %v614_v49  ;;  %v623_v7 = vld [vmem:[#allocation11 + $0x1c8] sm:$0xff] }
  0xb3   : > { %7395 = vst [vmem:[#allocation34_spill] sm:$0xff] %v5765_v54  ;;  %4729 = vmatprep.subr.bf16.mxu1 %v5753_v45  ;;  %v668_v63 = vand.u32 4294901760, %v616_v50  ;;  %v670_v0 = vand.u32 4294901760, %v619_v51  ;;  %v5775_v3 = vpack.c.bf16 %v660_v58, %v656_v57  ;;  %v5777_v4 = vsub.f32 %v610_v37, %v656_v57  ;;  %v625_v8 = vld [vmem:[#allocation11 + $0x1d8] sm:$0xff]  ;;  %v622_v10 = vld [vmem:[#allocation11 + $0x1c0] sm:$0xff]  ;;  %v624_v15 = vld [vmem:[#allocation11 + $0x1d0] sm:$0xff] }
  0xb4   : > { %v5779_v5 = vsub.f32 %v612_v42, %v660_v58  ;;  %v5781_v6 = vsub.f32 %v615_v43, %v662_v59  ;;  %v5785_v11 = vpack.c.bf16 %v666_v61, %v662_v59  ;;  %v5787_v12 = vsub.f32 %v617_v44, %v666_v61  ;;  %v627_v28 = vld [vmem:[#allocation11 + $0x1e8] sm:$0xff]  ;;  %v629_v41 = vld [vmem:[#allocation11 + $0x1f8] sm:$0xff]  ;;  %v626_v42 = vld [vmem:[#allocation11 + $0x1e0] sm:$0xff]  ;;  %s5860_s26 = sld [smem:[#allocation2 + $0x88]]  ;;  %s5875_s16 = sld [smem:[#allocation2 + $0x89]] }
  0xb5   : > { %7396 = vst [vmem:[#allocation35_spill] sm:$0xff] %v5775_v3  ;;  %v5789_v13 = vpack.c.bf16 %v668_v63, %v664_v62  ;;  %v5791_v14 = vsub.f32 %v614_v49, %v664_v62  ;;  %4347 = vmatpush1.bf16.msra.mxu0 %v5759_v48  ;;  %v5799_v20 = vsub.f32 %v616_v50, %v668_v63  ;;  %v674_v21 = vand.u32 4294901760, %v621_v60  ;;  %v628_v43 = vld [vmem:[#allocation11 + $0x1f0] sm:$0xff]  ;;  %s5883_s15 = sld [smem:[#allocation2 + $0x8a]]  ;;  %s5885_s27 = sld [smem:[#allocation2 + $0x8b]] }
  0xb6   : > { %7397 = vst [vmem:[#allocation36_spill] sm:$0xff] %v5785_v11  ;;  %4731 = vmatpush1.bf16.msra.mxu1 %v5759_v48  ;;  %v5801_v22 = vsub.f32 %v619_v51, %v670_v0  ;;  %v672_v27 = vand.u32 4294901760, %v618_v1  ;;  %4349 = vmatprep.subr.bf16.mxu0 %v5765_v54  ;;  %v676_v30 = vand.u32 4294901760, %v620_v2  ;;  %v678_v31 = vand.u32 4294901760, %v623_v7  ;;  %s5953_s2 = sld [smem:[#allocation2 + $0x188]]  ;;  %s5955_s3 = sld [smem:[#allocation2 + $0x189]] }
  0xb7   : > { %7398 = vst [vmem:[#allocation37_spill] sm:$0xff] %v5789_v13  ;;  %4733 = vmatprep.subr.bf16.mxu1 %v5765_v54  ;;  %v682_v32 = vand.u32 4294901760, %v625_v8  ;;  %v680_v33 = vand.u32 4294901760, %v622_v10  ;;  %v5809_v34 = vpack.c.bf16 %v674_v21, %v670_v0  ;;  %v5811_v35 = vsub.f32 %v621_v60, %v674_v21  ;;  %s5972_s4 = sld [smem:[#allocation2 + $0x18a]]  ;;  %s5974_s29 = sld [smem:[#allocation2 + $0x18b]] }
  0xb8   : > { %v5813_v36 = vsub.f32 %v618_v1, %v672_v27  ;;  %v684_v37 = vand.u32 4294901760, %v624_v15  ;;  %v5815_v44 = vpack.c.bf16 %v676_v30, %v672_v27  ;;  %v5817_v49 = vsub.f32 %v620_v2, %v676_v30  ;;  %p7614_p13 = scmp.ne.s32.totalorder %s7369_s30, 0 }
  0xb9   : > { %7399 = vst [vmem:[#allocation38_spill] sm:$0xff] %v5809_v34  ;;  %v5819_v50 = vpack.c.bf16 %v682_v32, %v678_v31  ;;  %v5821_v51 = vsub.f32 %v623_v7, %v678_v31  ;;  %4351 = vmatpush1.bf16.msra.mxu0 %v5775_v3  ;;  %v5827_v57 = vsub.f32 %v625_v8, %v682_v32  ;;  %v686_v60 = vand.u32 4294901760, %v627_v28 }
  0xba   : > { %7400 = vst [vmem:[#allocation39_spill] sm:$0xff] %v5815_v44  ;;  %4735 = vmatpush1.bf16.msra.mxu1 %v5775_v3  ;;  %v5829_v58 = vpack.c.bf16 %v684_v37, %v680_v33  ;;  %v5831_v59 = vsub.f32 %v622_v10, %v680_v33  ;;  %4353 = vmatprep.subr.bf16.mxu0 %v5785_v11  ;;  %v690_v62 = vand.u32 4294901760, %v629_v41  ;;  %v688_v63 = vand.u32 4294901760, %v626_v42  ;;  %v5878_v33 = vld [vmem:[%s5704_s1] sm:$0xff]  ;;  %s5908_s1 = sld [smem:[#allocation2 + $0x181]] }
  0xbb   : > { %7401 = vst [vmem:[#allocation40_spill] sm:$0xff] %v5819_v50  ;;  %4737 = vmatprep.subr.bf16.mxu1 %v5785_v11  ;;  %v5837_v61 = vsub.f32 %v624_v15, %v684_v37  ;;  %v692_v0 = vand.u32 4294901760, %v628_v43  ;;  %v5841_v1 = vsub.f32 %v627_v28, %v686_v60  ;;  %v7201_v2 = vand.u32 4294901760, %v5725_v17  ;;  %v5863_v28 = vld [vmem:[%s5711_s9] sm:$0xff]  ;;  %7406 = vst [vmem:[#allocation45_spill] sm:$0xff] %v5878_v33  ;;  %s5916_s9 = sld [smem:[#allocation2 + $0x180]] }
  0xbc   : > { %7402 = vst [vmem:[#allocation41_spill] sm:$0xff] %v5829_v58  ;;  %v7200_v7 = vand.u32 4294901760, %v5727_v18  ;;  %v376_v8 = vstv %s5783_s24  ;;  %v5850_v10 = vpack.c.bf16 %v690_v62, %v686_v60  ;;  %v5852_v15 = vsub.f32 %v629_v41, %v690_v62  ;;  %7405 = vst [vmem:[#allocation44_spill] sm:$0xff] %v5863_v28  ;;  %s5918_s24 = sld [smem:[#allocation2 + $0x182]] }
  0xbd   : > { %v5854_v21 = vpack.c.bf16 %v692_v0, %v688_v63  ;;  %v5856_v27 = vsub.f32 %v626_v42, %v688_v63  ;;  %4355 = vmatpush1.bf16.msra.mxu0 %v5789_v13  ;;  %v5867_v30 = vsub.f32 %v628_v43, %v692_v0  ;;  %v741_v31 = vsub.f32 %v5725_v17, %v7201_v2 }
  0xbe   : > { %7403 = vst [vmem:[#allocation42_spill] sm:$0xff] %v5850_v10  ;;  %4739 = vmatpush1.bf16.msra.mxu1 %v5789_v13  ;;  %v753_v32 = vsub.f32 %v5727_v18, %v7200_v7  ;;  %v378_v37 = vstv %s5793_s10  ;;  %4357 = vmatprep.subr.bf16.mxu0 %v5809_v34  ;;  %v377_v41 = vmul.f32 %v376_v8, %v5878_v33  ;;  %v380_v42 = vstv %s5795_s12  ;;  %s5926_s10 = sld [smem:[#allocation2 + $0x183]]  ;;  %s5928_s12 = sld [smem:[#allocation2 + $0x184]] }
  0xbf   : > { %7404 = vst [vmem:[#allocation43_spill] sm:$0xff] %v5854_v21  ;;  %4741 = vmatprep.subr.bf16.mxu1 %v5809_v34  ;;  %v397_v43 = vstv %s5803_s6  ;;  %v400_v60 = vstv %s5807_s8  ;;  %v742_v62 = vand.u32 4294901760, %v741_v31  ;;  %v381_v0 = vmul.f32 %v380_v42, %v5863_v28  ;;  %s5936_s6 = sld [smem:[#allocation2 + $0x185]]  ;;  %s5945_s8 = sld [smem:[#allocation2 + $0x186]] }
  0xc0   : > { %v754_v63 = vand.u32 4294901760, %v753_v32  ;;  %v398_v7 = vsub.f32 %v5863_v28, %v397_v43  ;;  %v379_v2 = vadd.f32 %v378_v37, %v377_v41  ;;  %v401_v9 = vsub.f32 %v5863_v28, %v400_v60 }
  0xc1   : > { %v403_v34 = vstv %s5823_s14  ;;  %v406_v13 = vsub.f32 %v5878_v33, %v397_v43  ;;  %4359 = vmatpush1.bf16.msra.mxu0 %v5815_v44  ;;  %s5947_s14 = sld [smem:[#allocation2 + $0x187]]  ;;  %v509_v45 = vstv %s5953_s2  ;;  %s4279_s2 = sld [smem:[#allocation2 + $0x1]] }
  0xc2   : > { %4743 = vmatpush1.bf16.msra.mxu1 %v5815_v44  ;;  %v4368_v8 = vpack.c.bf16 %v754_v63, %v742_v62  ;;  %v399_v31 = vmul.f32 %v398_v7, %v398_v7  ;;  %v404_v32 = vsub.f32 %v5863_v28, %v403_v34  ;;  %4361 = vmatprep.subr.bf16.mxu0 %v5819_v50  ;;  %v7221_v44 = vand.u32 4294901760, %v5729_v19 }
  0xc3   : > { %4745 = vmatprep.subr.bf16.mxu1 %v5819_v50  ;;  %v5902_v37 = vadd.f32 %v381_v0, %v379_v2  ;;  %v402_v41 = vmul.f32 %v401_v9, %v401_v9  ;;  %v407_v43 = vmul.f32 %v406_v13, %v406_v13  ;;  %v459_v62 = vsub.f32 %v5878_v33, %v400_v60 }
  0xc4   : > { %v405_v3 = vmul.f32 %v404_v32, %v404_v32  ;;  %v512_v2 = vsub.f32 %v5878_v33, %v403_v34 }
  0xc5   : > { %v5910_v63 = vadd.f32 %v407_v43, %v399_v31  ;;  %v5912_v42 = vadd.f32 %v407_v43, %v402_v41  ;;  %4363 = vmatpush1.bf16.msra.mxu0 %v5829_v58  ;;  %v460_v13 = vmul.f32 %v459_v62, %v459_v62 }
  0xc6   : > { %4747 = vmatpush1.bf16.msra.mxu1 %v5829_v58  ;;  %v5922_v9 = vadd.f32 %v407_v43, %v405_v3  ;;  %4365 = vmatprep.subr.bf16.mxu0 %v5850_v10  ;;  %v513_v7 = vmul.f32 %v512_v2, %v512_v2  ;;  %v475_v58 = vstv %s5945_s8  ;;  %s6591_s8 = sld [smem:[#allocation2 + $0x109]] }
  0xc7   : > { %4749 = vmatprep.subr.bf16.mxu1 %v5850_v10  ;;  %v7218_v0 = vmax.f32 %v5910_v63, 1e-30  ;;  %v7222_v32 = vmax.f32 %v5912_v42, 1e-30  ;;  %v5939_v34 = vadd.f32 %v460_v13, %v399_v31  ;;  %v5941_v62 = vadd.f32 %v460_v13, %v402_v41 }
  0xc8   : > { %v7219_v43 = vmax.f32 %v5922_v9, 1e-30  ;;  %v5943_v60 = vadd.f32 %v460_v13, %v405_v3  ;;  %v5966_v11 = vadd.f32 %v513_v7, %v399_v31  ;;  %v5970_v50 = vadd.f32 %v513_v7, %v405_v3 }
  0xc9   : > { %5236 = vlog2.f32 %v7218_v0  ;;  %4367 = vmatpush1.bf16.msra.mxu0 %v5854_v21  ;;  %v7220_v13 = vmax.f32 %v5939_v34, 1e-30  ;;  %v7223_v2 = vmax.f32 %v5941_v62, 1e-30  ;;  %v5968_v0 = vadd.f32 %v513_v7, %v402_v41 }
  0xca   : > { %4751 = vmatpush1.bf16.msra.mxu1 %v5854_v21  ;;  %5238 = vlog2.f32 %v7222_v32  ;;  %v7228_v54 = vmax.f32 %v5943_v60, 1e-30  ;;  %4369 = vmatprep.subr.bf16.mxu0 %v4368_v8  ;;  %v7407_v31 = vand.u32 4294901760, %v5733_v24  ;;  %v390_v3 = vstv %s5908_s1  ;;  %s6555_s1 = sld [smem:[#allocation2 + $0x106]] }
  0xcb   : > { %4753 = vmatprep.subr.bf16.mxu1 %v4368_v8  ;;  %5240 = vlog2.f32 %v7219_v43  ;;  %v747_v8 = vsub.f32 %v5729_v19, %v7221_v44  ;;  %v7233_v7 = vmax.f32 %v5966_v11, 1e-30  ;;  %v394_v43 = vstv %s5918_s24  ;;  %s6567_s24 = sld [smem:[#allocation2 + $0x107]] }
  0xcc   : > { %5242 = vlog2.f32 %v7220_v13  ;;  %v759_v41 = vsub.f32 %v5733_v24, %v7407_v31  ;;  %v391_v31 = vmul.f32 %v390_v3, %v5878_v33  ;;  %v422_v21 = vstv %s5926_s10  ;;  %s6573_s10 = sld [smem:[#allocation2 + $0x8]] }
  0xcd   : > { %5244 = vlog2.f32 %v7223_v2  ;;  %v748_v44 = vand.u32 4294901760, %v747_v8  ;;  %v392_v2 = vstv %s5916_s9  ;;  %v7408_v13 = vmax.f32 %v5968_v0, 1e-30  ;;  %s6561_s9 = sld [smem:[#allocation2 + $0x7]] }
  0xce   : > { %5246 = vlog2.f32 %v7228_v54  ;;  %v760_v32 = vand.u32 4294901760, %v759_v41  ;;  %v393_v8 = vadd.f32 %v392_v2, %v391_v31  ;;  %v395_v41 = vmul.f32 %v394_v43, %v5863_v28 }
  0xcf   : > { %5248 = vlog2.f32 %v7233_v7  ;;  %v7409_v54 = vmax.f32 %v5970_v50, 1e-30  ;;  %v439_v3 = vstv %s5928_s12  ;;  %v456_v33 = vstv %s5936_s6  ;;  %s6579_s12 = sld [smem:[#allocation2 + $0x108]]  ;;  %s6585_s6 = sld [smem:[#allocation2 + $0x9]] }
  0xd0   : > { %5250 = vlog2.f32 %v7408_v13  ;;  %v6000_v10 = vpack.c.bf16 %v760_v32, %v748_v44  ;;  %v396_v7 = vadd.f32 %v395_v41, %v393_v8  ;;  %v492_v48 = vstv %s5947_s14  ;;  %s6597_s14 = sld [smem:[#allocation2 + $0xa]] }
  0xd1   : > { %5252 = vlog2.f32 %v7409_v54  ;;  %v7250_v13 = vand.u32 4294901760, %v5737_v26  ;;  %v7253_v44 = vand.u32 4294901760, %v5741_v29  ;;  %v7258_v43 = vand.u32 4294901760, %v5749_v39 }
  0xd2   : > { %v7410_v38 = vmax.f32 %v5910_v63, 1e-30  ;;  %v7412_v24 = vand.u32 4294901760, %v5751_v40 }
  0xd3   : > { %v5237_v25 = vpop.eup %5236  ;;  %v765_v41 = vsub.f32 %v5737_v26, %v7250_v13  ;;  %v777_v16 = vsub.f32 %v5741_v29, %v7253_v44  ;;  %v7413_v44 = vmax.f32 %v5912_v42, 1e-30  ;;  %v7418_v42 = vstv %s5839_s7  ;;  %s4304_s7 = sld [smem:[#allocation2 + $0x102]] }
  0xd4   : > { %v5239_v32 = vpop.eup %5238  ;;  %v411_v2 = vmul.f32 0.6931472, %v5237_v25  ;;  %v783_v13 = vsub.f32 %v5751_v40, %v7412_v24 }
  0xd5   : > { %v5241_v28 = vpop.eup %5240  ;;  %v428_v8 = vmul.f32 0.6931472, %v5239_v32  ;;  %v771_v32 = vsub.f32 %v5749_v39, %v7258_v43  ;;  %v766_v63 = vand.u32 4294901760, %v765_v41  ;;  %v778_v19 = vand.u32 4294901760, %v777_v16 }
  0xd6   : > { %v5243_v25 = vpop.eup %5242  ;;  %v6027_v54 = vmul.f32 %v411_v2, %v7410_v38  ;;  %v445_v31 = vmul.f32 0.6931472, %v5241_v28  ;;  %v7415_v28 = vstv %s5833_s0  ;;  %v7416_v43 = vmax.f32 %v5922_v9, 1e-30  ;;  %s6509_s0 = sld [smem:[#allocation2 + $0x100]] }
  0xd7   : > { %v5245_v26 = vpop.eup %5244  ;;  %v6037_v29 = vmul.f32 %v428_v8, %v7413_v44  ;;  %v464_v23 = vmul.f32 0.6931472, %v5243_v25  ;;  %v7419_v8 = vmax.f32 %v5939_v34, 1e-30 }
  0xd8   : > { %7411 = vst [vmem:[#allocation46_spill] sm:$0xff] %v6027_v54  ;;  %v5247_v38 = vpop.eup %5246  ;;  %v417_v2 = vmul.f32 %v7415_v28, %v6027_v54  ;;  %v6044_v39 = vmul.f32 %v445_v31, %v7416_v43  ;;  %v481_v18 = vmul.f32 0.6931472, %v5245_v26  ;;  %v423_v24 = vmul.f32 %v422_v21, %v6027_v54 }
  0xd9   : > { %7414 = vst [vmem:[#allocation47_spill] sm:$0xff] %v6037_v29  ;;  %v5249_v40 = vpop.eup %5248  ;;  %v434_v44 = vmul.f32 %v7418_v42, %v6037_v29  ;;  %v6052_v16 = vmul.f32 %v464_v23, %v7419_v8  ;;  %v498_v41 = vmul.f32 0.6931472, %v5247_v38  ;;  %v440_v25 = vmul.f32 %v439_v3, %v6037_v29 }
  0xda   : > { %7417 = vst [vmem:[#allocation48_spill] sm:$0xff] %v6044_v39  ;;  %v5251_v28 = vpop.eup %5250  ;;  %v418_v9 = vadd.f32 %v417_v2, %v5902_v37  ;;  %v7421_v26 = vstv %s5845_s11  ;;  %v7422_v21 = vmax.f32 %v5941_v62, 1e-30  ;;  %v517_v42 = vmul.f32 0.6931472, %v5249_v40  ;;  %s6513_s11 = sld [smem:[#allocation2 + $0x3]] }
  0xdb   : > { %7420 = vst [vmem:[#allocation49_spill] sm:$0xff] %v6052_v16  ;;  %v451_v43 = vmul.f32 %v7421_v26, %v6044_v39  ;;  %v5253_v54 = vpop.eup %5252  ;;  %v7424_v23 = vstv %s5847_s13  ;;  %v7425_v38 = vmax.f32 %v5943_v60, 1e-30  ;;  %v534_v8 = vmul.f32 0.6931472, %v5251_v28  ;;  %s6517_s13 = sld [smem:[#allocation2 + $0x103]] }
  0xdc   : > { %v6061_v31 = vmul.f32 %v481_v18, %v7422_v21  ;;  %v470_v34 = vmul.f32 %v7424_v23, %v6052_v16  ;;  %v424_v37 = vadd.f32 %v423_v24, %v396_v7  ;;  %v435_v2 = vadd.f32 %v434_v44, %v418_v9 }
  0xdd   : > { %v6068_v3 = vmul.f32 %v498_v41, %v7425_v38  ;;  %v7427_v26 = vstv %s5858_s23  ;;  %v7428_v18 = vmax.f32 %v5966_v11, 1e-30  ;;  %v551_v40 = vmul.f32 0.6931472, %v5253_v54  ;;  %s6522_s23 = sld [smem:[#allocation2 + $0x4]] }
  0xde   : > { %7423 = vst [vmem:[#allocation50_spill] sm:$0xff] %v6061_v31  ;;  %v487_v29 = vmul.f32 %v7427_v26, %v6061_v31  ;;  %v7430_v21 = vstv %s5860_s26  ;;  %v7431_v41 = vmax.f32 %v5968_v0, 1e-30  ;;  %v441_v7 = vadd.f32 %v440_v25, %v424_v37  ;;  %s6527_s26 = sld [smem:[#allocation2 + $0x104]] }
  0xdf   : > { %7426 = vst [vmem:[#allocation51_spill] sm:$0xff] %v6068_v3  ;;  %v6075_v62 = vmul.f32 %v517_v42, %v7428_v18  ;;  %v504_v60 = vmul.f32 %v7430_v21, %v6068_v3  ;;  %v457_v24 = vmul.f32 %v456_v33, %v6044_v39  ;;  %v452_v44 = vadd.f32 %v451_v43, %v435_v2 }
  0xe0   : > { %v6082_v23 = vmul.f32 %v534_v8, %v7431_v41  ;;  %v7433_v11 = vstv %s5875_s16  ;;  %v7434_v9 = vmax.f32 %v5970_v50, 1e-30  ;;  %v476_v54 = vmul.f32 %v475_v58, %v6052_v16  ;;  %s6535_s16 = sld [smem:[#allocation2 + $0x5]] }
  0xe1   : > { %7429 = vst [vmem:[#allocation52_spill] sm:$0xff] %v6075_v62  ;;  %v523_v28 = vmul.f32 %v7433_v11, %v6075_v62  ;;  %v7436_v38 = vstv %s5883_s15  ;;  %v458_v0 = vadd.f32 %v457_v24, %v441_v7  ;;  %v493_v8 = vmul.f32 %v492_v48, %v6061_v31  ;;  %s6541_s15 = sld [smem:[#allocation2 + $0x105]] }
  0xe2   : > { %7432 = vst [vmem:[#allocation53_spill] sm:$0xff] %v6082_v23  ;;  %v6090_v42 = vmul.f32 %v551_v40, %v7434_v9  ;;  %v540_v26 = vmul.f32 %v7436_v38, %v6082_v23  ;;  %v510_v25 = vmul.f32 %v509_v45, %v6068_v3  ;;  %v471_v37 = vadd.f32 %v470_v34, %v452_v44 }
  0xe3   : > { %v7437_v33 = vstv %s5885_s27  ;;  %v7438_v2 = vstv %s5955_s3  ;;  %v7439_v50 = vstv %s5972_s4  ;;  %v477_v21 = vadd.f32 %v476_v54, %v458_v0  ;;  %s4303_s3 = sld [smem:[#allocation2 + $0x101]]  ;;  %s316_s4 = sld [smem:[#allocation2]] }
  0xe4   : > { %7435 = vst [vmem:[#allocation54_spill] sm:$0xff] %v6090_v42  ;;  %v557_v43 = vmul.f32 %v7437_v33, %v6090_v42  ;;  %v529_v18 = vmul.f32 %v7438_v2, %v6075_v62  ;;  %v546_v40 = vmul.f32 %v7439_v50, %v6082_v23  ;;  %v7440_v58 = vstv %s5974_s29  ;;  %v7452_v62 = vld [vmem:[#allocation31_spill] sm:$0xff]  ;;  %s4280_s29 = sld [smem:[#allocation2 + $0x2]]  ;;  %s6549_s27 = sld [smem:[#allocation2 + $0x6]] }
  0xe5   : > { %v563_v41 = vmul.f32 %v7440_v58, %v6090_v42  ;;  %v6110_v11 = vpack.c.bf16 %v778_v19, %v766_v63  ;;  %v772_v7 = vand.u32 4294901760, %v771_v32  ;;  %v488_v48 = vadd.f32 %v487_v29, %v471_v37  ;;  %v7448_v42 = vld [vmem:[#allocation25_spill] sm:$0xff] }
  0xe6   : > { %v784_v24 = vand.u32 4294901760, %v783_v13  ;;  %v7441_v45 = vand.u32 4294901760, %v5755_v46  ;;  %v7442_v44 = vand.u32 4294901760, %v5757_v47  ;;  %v494_v38 = vadd.f32 %v493_v8, %v477_v21 }
  0xe7   : > { %v7291_v33 = vand.u32 4294901760, %v5761_v52  ;;  %v7281_v54 = vand.u32 4294901760, %v5763_v53  ;;  %v7280_v0 = vand.u32 4294901760, %v5767_v55  ;;  %v505_v19 = vadd.f32 %v504_v60, %v488_v48 }
  0xe8   : > { %v789_v34 = vsub.f32 %v5755_v46, %v7441_v45  ;;  %v801_v9 = vsub.f32 %v5757_v47, %v7442_v44  ;;  %v6121_v63 = vpack.c.bf16 %v784_v24, %v772_v7  ;;  %v511_v32 = vadd.f32 %v510_v25, %v494_v38 }
  0xe9   : > { %v795_v37 = vsub.f32 %v5761_v52, %v7291_v33  ;;  %v807_v8 = vsub.f32 %v5763_v53, %v7281_v54  ;;  %v813_v2 = vsub.f32 %v5767_v55, %v7280_v0  ;;  %v524_v50 = vadd.f32 %v523_v28, %v505_v19  ;;  %v7447_v33 = vld [vmem:[#allocation23_spill] sm:$0xff] }
  0xea   : > { %v790_v29 = vand.u32 4294901760, %v789_v34  ;;  %v802_v13 = vand.u32 4294901760, %v801_v9  ;;  %v7278_v60 = vand.u32 4294901760, %v5771_v56  ;;  %v7276_v58 = vand.u32 4294901760, %v5777_v4 }
  0xeb   : > { %v530_v25 = vadd.f32 %v529_v18, %v511_v32  ;;  %v796_v7 = vand.u32 4294901760, %v795_v37  ;;  %v808_v48 = vand.u32 4294901760, %v807_v8  ;;  %v814_v24 = vand.u32 4294901760, %v813_v2 }
  0xec   : > { %v6132_v21 = vpack.c.bf16 %v802_v13, %v790_v29  ;;  %v541_v45 = vadd.f32 %v540_v26, %v524_v50  ;;  %v825_v34 = vsub.f32 %v5771_v56, %v7278_v60  ;;  %v819_v44 = vsub.f32 %v5777_v4, %v7276_v58 }
  0xed   : > { %v7274_v28 = vand.u32 4294901760, %v5779_v5  ;;  %v547_v9 = vadd.f32 %v546_v40, %v530_v25  ;;  %v6143_v38 = vpack.c.bf16 %v808_v48, %v796_v7  ;;  %v7272_v19 = vand.u32 4294901760, %v5781_v6 }
  0xee   : > { %v7269_v18 = vand.u32 4294901760, %v5787_v12  ;;  %v558_v29 = vadd.f32 %v557_v43, %v541_v45  ;;  %v826_v13 = vand.u32 4294901760, %v825_v34  ;;  %v820_v26 = vand.u32 4294901760, %v819_v44 }
  0xef   : > { %v831_v32 = vsub.f32 %v5779_v5, %v7274_v28  ;;  %v564_v37 = vadd.f32 %v563_v41, %v547_v9  ;;  %v837_v8 = vsub.f32 %v5781_v6, %v7272_v19  ;;  %v7270_v2 = vand.u32 4294901760, %v5791_v14 }
  0xf0   : > { %v849_v40 = vsub.f32 %v5787_v12, %v7269_v18  ;;  %v6157_v50 = vand.u32 4294901760, %v558_v29  ;;  %v6159_v43 = vpack.c.bf16 %v826_v13, %v814_v24  ;;  %v7271_v7 = vand.u32 4294901760, %v5799_v20 }
  0xf1   : > { %v832_v25 = vand.u32 4294901760, %v831_v32  ;;  %v6162_v48 = vand.u32 4294901760, %v564_v37  ;;  %v838_v41 = vand.u32 4294901760, %v837_v8  ;;  %v843_v34 = vsub.f32 %v5791_v14, %v7270_v2 }
  0xf2   : > { %v850_v45 = vand.u32 4294901760, %v849_v40  ;;  %v6168_v44 = vsub.f32 %v558_v29, %v6157_v50  ;;  %v855_v24 = vsub.f32 %v5799_v20, %v7271_v7  ;;  %v7273_v13 = vand.u32 4294901760, %v5801_v22 }
  0xf3   : > { %v6170_v9 = vpack.c.bf16 %v832_v25, %v820_v26  ;;  %v6177_v32 = vsub.f32 %v564_v37, %v6162_v48  ;;  %v844_v40 = vand.u32 4294901760, %v843_v34  ;;  %v7275_v18 = vand.u32 4294901760, %v5811_v35 }
  0xf4   : > { %7443 = vst [vmem:[#allocation55_spill] sm:$0xff] %v6168_v44  ;;  %v6179_v8 = vpack.c.bf16 %v850_v45, %v838_v41  ;;  %v7277_v2 = vand.u32 4294901760, %v6168_v44  ;;  %v856_v29 = vand.u32 4294901760, %v855_v24  ;;  %v861_v26 = vsub.f32 %v5801_v22, %v7273_v13 }
  0xf5   : > { %7444 = vst [vmem:[#allocation56_spill] sm:$0xff] %v6177_v32  ;;  %v7279_v25 = vand.u32 4294901760, %v5813_v36  ;;  %v7282_v7 = vand.u32 4294901760, %v6177_v32  ;;  %v873_v37 = vsub.f32 %v5811_v35, %v7275_v18  ;;  %v7289_v41 = vand.u32 4294901760, %v5817_v49 }
  0xf6   : > { %v7283_v45 = vand.u32 4294901760, %v5821_v51  ;;  %v730_v34 = vsub.f32 %v6168_v44, %v7277_v2  ;;  %v6196_v24 = vpack.c.bf16 %v856_v29, %v844_v40  ;;  %v862_v19 = vand.u32 4294901760, %v861_v26 }
  0xf7   : > { %v867_v13 = vsub.f32 %v5813_v36, %v7279_v25  ;;  %v2506_v28 = vsub.f32 %v6177_v32, %v7282_v7  ;;  %v874_v18 = vand.u32 4294901760, %v873_v37  ;;  %v879_v58 = vsub.f32 %v5817_v49, %v7289_v41 }
  0xf8   : > { %v885_v2 = vsub.f32 %v5821_v51, %v7283_v45  ;;  %v731_v40 = vand.u32 4294901760, %v730_v34  ;;  %v7286_v26 = vand.u32 4294901760, %v5827_v57  ;;  %v7284_v60 = vand.u32 4294901760, %v5831_v59 }
  0xf9   : > { %v868_v29 = vand.u32 4294901760, %v867_v13  ;;  %v2507_v25 = vand.u32 4294901760, %v2506_v28  ;;  %v6212_v0 = vpack.c.bf16 %v874_v18, %v862_v19  ;;  %v880_v54 = vand.u32 4294901760, %v879_v58 }
  0xfa   : > { %v886_v7 = vand.u32 4294901760, %v885_v2  ;;  %732 = vmatmul.mubr.f32.vlgmr.msra.gmra.mrb[0].mxu0 %v731_v40  ;;  %v897_v37 = vsub.f32 %v5827_v57, %v7286_v26  ;;  %v891_v45 = vsub.f32 %v5831_v59, %v7284_v60  ;;  %v7285_v13 = vand.u32 4294901760, %v5837_v61 }
  0xfb   : > { %v7287_v34 = vand.u32 4294901760, %v5841_v1  ;;  %4371 = vmatpush1.bf16.msra.mxu0 %v6000_v10  ;;  %2508 = vmatmul.mubr.f32.vlgmr.msra.gmra.mrb[0].mxu1 %v2507_v25  ;;  %v6223_v28 = vpack.c.bf16 %v880_v54, %v868_v29  ;;  %v7288_v58 = vand.u32 4294901760, %v5852_v15  ;;  %v7290_v19 = vand.u32 4294901760, %v5856_v27 }
  0xfc   : > { %v7296_v18 = vand.u32 4294901760, %v5867_v30  ;;  %4755 = vmatpush1.bf16.msra.mxu1 %v6000_v10  ;;  %4373 = vmatprep.subr.bf16.mxu0 %v6110_v11  ;;  %v898_v2 = vand.u32 4294901760, %v897_v37  ;;  %v892_v40 = vand.u32 4294901760, %v891_v45  ;;  %v903_v60 = vsub.f32 %v5837_v61, %v7285_v13 }
  0xfd   : > { %v909_v54 = vsub.f32 %v5841_v1, %v7287_v34  ;;  %4757 = vmatprep.subr.bf16.mxu1 %v6110_v11  ;;  %v921_v25 = vsub.f32 %v5852_v15, %v7288_v58  ;;  %v915_v10 = vsub.f32 %v5856_v27, %v7290_v19  ;;  %v7445_v29 = vmov 0.0   ;;  %v7446_v34 = vld [vmem:[#allocation22_spill] sm:$0xff] }
  0xfe   : > { %v927_v45 = vsub.f32 %v5867_v30, %v7296_v18  ;;  %962 = vmatprep.mubr.f32.mxu0 %v7445_v29  ;;  %v4392_v37 = vpack.c.bf16 %v898_v2, %v886_v7  ;;  %v904_v13 = vand.u32 4294901760, %v903_v60  ;;  %v6249_v11 = vpack.c.bf16 %v7446_v34, %v5725_v17  ;;  %2738 = vmatprep.mubr.f32.mxu1 %v7445_v29  ;;  %v7449_v7 = vld [vmem:[#allocation27_spill] sm:$0xff]  ;;  %v7450_v2 = vld [vmem:[#allocation28_spill] sm:$0xff]  ;;  %v7451_v18 = vld [vmem:[#allocation30_spill] sm:$0xff] }
  0xff   : > { %v910_v26 = vand.u32 4294901760, %v909_v54  ;;  %4375 = vmatpush1.bf16.msra.mxu0 %v6121_v63  ;;  %v922_v58 = vand.u32 4294901760, %v921_v25  ;;  %v916_v41 = vand.u32 4294901760, %v915_v10  ;;  %v4402_v23 = vpack.c.bf16 %v7448_v42, %v7447_v33 }
 0x100   : > { %v928_v19 = vand.u32 4294901760, %v927_v45  ;;  %4759 = vmatpush1.bf16.msra.mxu1 %v6121_v63  ;;  %4377 = vmatprep.subr.bf16.mxu0 %v6132_v21  ;;  %v4394_v60 = vpack.c.bf16 %v904_v13, %v892_v40  ;;  %v4404_v54 = vpack.c.bf16 %v7450_v2, %v7449_v7  ;;  %v6261_v3 = vpack.c.bf16 %v7452_v62, %v7451_v18 }
 0x101   : > { %4761 = vmatprep.subr.bf16.mxu1 %v6132_v21  ;;  %v4396_v25 = vpack.c.bf16 %v922_v58, %v910_v26  ;;  %v4408_v45 = vpack.c.bf16 %v5757_v47, %v5755_v46  ;;  %v4410_v63 = vpack.c.bf16 %v5763_v53, %v5761_v52  ;;  %v6270_v13 = vpack.c.bf16 %v5771_v56, %v5767_v55 }
 0x102   : > { %v4398_v10 = vpack.c.bf16 %v928_v19, %v916_v41  ;;  %v6274_v40 = vpack.c.bf16 %v5779_v5, %v5777_v4  ;;  %v6278_v31 = vpack.c.bf16 %v5787_v12, %v5781_v6  ;;  %v6282_v21 = vpack.c.bf16 %v5799_v20, %v5791_v14 }
 0x103   : > { %4379 = vmatpush1.bf16.msra.mxu0 %v6143_v38  ;;  %v6287_v41 = vpack.c.bf16 %v5811_v35, %v5801_v22  ;;  %v6291_v26 = vpack.c.bf16 %v5817_v49, %v5813_v36  ;;  %v6295_v58 = vpack.c.bf16 %v5827_v57, %v5821_v51  ;;  %v6299_v19 = vpack.c.bf16 %v5837_v61, %v5831_v59 }
 0x104   : > { %4763 = vmatpush1.bf16.msra.mxu1 %v6143_v38  ;;  %4381 = vmatprep.subr.bf16.mxu0 %v6159_v43  ;;  %v6305_v16 = vpack.c.bf16 %v5852_v15, %v5841_v1  ;;  %v6309_v39 = vpack.c.bf16 %v5867_v30, %v5856_v27  ;;  %v7458_v34 = vand.u32 4294901760, %v7447_v33  ;;  %v7459_v17 = vand.u32 4294901760, %v7448_v42 }
 0x105   : > { %7453 = vst [vmem:[#allocation23_spill] sm:$0xff] %v6291_v26  ;;  %7454 = vst [vmem:[#allocation25_spill] sm:$0xff] %v6295_v58  ;;  %4765 = vmatprep.subr.bf16.mxu1 %v6159_v43  ;;  %v7460_v38 = vand.u32 4294901760, %v7449_v7  ;;  %v7461_v44 = vand.u32 4294901760, %v7450_v2  ;;  %v7463_v58 = vand.u32 4294901760, %v7452_v62  ;;  %v7464_v43 = vand.u32 4294901760, %v5755_v46 }
 0x106   : > { %7455 = vst [vmem:[#allocation27_spill] sm:$0xff] %v6299_v19  ;;  %7456 = vst [vmem:[#allocation28_spill] sm:$0xff] %v6305_v16  ;;  %v6316_v32 = vpack.c.bf16 %v7459_v17, %v7458_v34  ;;  %v7462_v16 = vand.u32 4294901760, %v7451_v18  ;;  %v7465_v33 = vand.u32 4294901760, %v5757_v47  ;;  %v7466_v17 = vand.u32 4294901760, %v5761_v52 }
 0x107   : > { %7457 = vst [vmem:[#allocation30_spill] sm:$0xff] %v6309_v39  ;;  %v6322_v19 = vpack.c.bf16 %v7461_v44, %v7460_v38  ;;  %v7467_v42 = vand.u32 4294901760, %v5763_v53  ;;  %v7468_v44 = vand.u32 4294901760, %v5767_v55  ;;  %v7469_v18 = vand.u32 4294901760, %v5771_v56  ;;  %4383 = vmatpush1.bf16.msra.mxu0 %v6170_v9 }
 0x108   : > { %v6328_v26 = vpack.c.bf16 %v7463_v58, %v7462_v16  ;;  %v6334_v39 = vpack.c.bf16 %v7465_v33, %v7464_v43  ;;  %v7470_v16 = vand.u32 4294901760, %v5777_v4  ;;  %v7471_v46 = vand.u32 4294901760, %v5779_v5  ;;  %4767 = vmatpush1.bf16.msra.mxu1 %v6170_v9  ;;  %4385 = vmatprep.subr.bf16.mxu0 %v6179_v8  ;;  %v7498_v9 = vld [vmem:[#allocation29_spill] sm:$0xff] }
 0x109   : > { %v6340_v34 = vpack.c.bf16 %v7467_v42, %v7466_v17  ;;  %v6346_v7 = vpack.c.bf16 %v7469_v18, %v7468_v44  ;;  %v7472_v47 = vand.u32 4294901760, %v5781_v6  ;;  %v7473_v52 = vand.u32 4294901760, %v5787_v12  ;;  %4769 = vmatprep.subr.bf16.mxu1 %v6179_v8  ;;  %v7499_v8 = vld [vmem:[#allocation32_spill] sm:$0xff]  ;;  %v7514_v18 = vld [vmem:[#allocation43_spill] sm:$0xff] }
 0x10a   : > { %v6352_v62 = vpack.c.bf16 %v7471_v46, %v7470_v16  ;;  %v7474_v53 = vand.u32 4294901760, %v5791_v14  ;;  %v7475_v55 = vand.u32 4294901760, %v5799_v20  ;;  %v7476_v4 = vand.u32 4294901760, %v5801_v22 }
 0x10b   : > { %v6358_v2 = vpack.c.bf16 %v7473_v52, %v7472_v47  ;;  %v7477_v5 = vand.u32 4294901760, %v5811_v35  ;;  %v7478_v6 = vand.u32 4294901760, %v5813_v36  ;;  %v7479_v12 = vand.u32 4294901760, %v5817_v49  ;;  %4387 = vmatpush1.bf16.msra.mxu0 %v6196_v24 }
 0x10c   : > { %v6365_v56 = vpack.c.bf16 %v7475_v55, %v7474_v53  ;;  %v7480_v43 = vand.u32 4294901760, %v5821_v51  ;;  %v7481_v14 = vand.u32 4294901760, %v5827_v57  ;;  %v7482_v20 = vand.u32 4294901760, %v5831_v59  ;;  %4771 = vmatpush1.bf16.msra.mxu1 %v6196_v24  ;;  %4389 = vmatprep.subr.bf16.mxu0 %v6212_v0  ;;  %v7488_v59 = vld [vmem:[#allocation23_spill] sm:$0xff]  ;;  %v7500_v24 = vld [vmem:[#allocation33_spill] sm:$0xff]  ;;  %v7518_v53 = vld [vmem:[#allocation44_spill] sm:$0xff] }
 0x10d   : > { %v6371_v58 = vpack.c.bf16 %v7477_v5, %v7476_v4  ;;  %v6377_v38 = vpack.c.bf16 %v7479_v12, %v7478_v6  ;;  %v7483_v22 = vand.u32 4294901760, %v5837_v61  ;;  %v7484_v36 = vand.u32 4294901760, %v5841_v1  ;;  %4773 = vmatprep.subr.bf16.mxu1 %v6212_v0  ;;  %v7489_v61 = vld [vmem:[#allocation25_spill] sm:$0xff]  ;;  %v7490_v1 = vld [vmem:[#allocation27_spill] sm:$0xff]  ;;  %v7497_v0 = vld [vmem:[#allocation26_spill] sm:$0xff] }
 0x10e   : > { %v6383_v33 = vpack.c.bf16 %v7481_v14, %v7480_v43  ;;  %v7485_v49 = vand.u32 4294901760, %v5852_v15  ;;  %v7486_v51 = vand.u32 4294901760, %v5856_v27  ;;  %v7487_v57 = vand.u32 4294901760, %v5867_v30  ;;  %v7491_v15 = vld [vmem:[#allocation28_spill] sm:$0xff]  ;;  %v7492_v27 = vld [vmem:[#allocation30_spill] sm:$0xff] }
 0x10f   : > { %v6391_v35 = vpack.c.bf16 %v7483_v22, %v7482_v20  ;;  %4391 = vmatpush1.bf16.msra.mxu0 %v6223_v28  ;;  %v7493_v30 = vld [vmem:[#allocation20_spill] sm:$0xff]  ;;  %v385_v47 = vstv %s6509_s0  ;;  %v387_v52 = vstv %s4304_s7  ;;  %v7519_v12 = vld [vmem:[#allocation46_spill] sm:$0xff]  ;;  %v430_v43 = vstv %s6522_s23 }
 0x110   : > { %v6397_v17 = vpack.c.bf16 %v7485_v49, %v7484_v36  ;;  %v6403_v42 = vpack.c.bf16 %v7487_v57, %v7486_v51  ;;  %4775 = vmatpush1.bf16.msra.mxu1 %v6223_v28  ;;  %4393 = vmatprep.subr.bf16.mxu0 %v4392_v37  ;;  %v7501_v28 = vld [vmem:[#allocation34_spill] sm:$0xff]  ;;  %v388_v5 = vmul.f32 %v387_v52, %v7518_v53  ;;  %v436_v20 = vstv %s6527_s26 }
 0x111   : > { %4777 = vmatprep.subr.bf16.mxu1 %v4392_v37  ;;  %v7502_v37 = vld [vmem:[#allocation35_spill] sm:$0xff]  ;;  %v447_v49 = vstv %s6535_s16  ;;  %v453_v57 = vstv %s6541_s15  ;;  %s4120_s16 = scalar_lea.sflag [#allocation4], %s5700_s28  ;;  %s5462_s15 = smov [#allocation12]  }
 0x113   : > { %4395 = vmatpush1.bf16.msra.mxu0 %v4394_v60 }
 0x114   : > { %4779 = vmatpush1.bf16.msra.mxu1 %v4394_v60  ;;  %4397 = vmatprep.subr.bf16.mxu0 %v4396_v25  ;;  %v7504_v60 = vld [vmem:[#allocation37_spill] sm:$0xff] }
 0x115   : > { %4781 = vmatprep.subr.bf16.mxu1 %v4396_v25  ;;  %v7506_v25 = vld [vmem:[#allocation39_spill] sm:$0xff] }
 0x117   : > { %4399 = vmatpush1.bf16.msra.mxu0 %v4398_v10 }
 0x118   : > { %4783 = vmatpush1.bf16.msra.mxu1 %v4398_v10  ;;  %4401 = vmatprep.subr.bf16.mxu0 %v6249_v11  ;;  %v7507_v10 = vld [vmem:[#allocation40_spill] sm:$0xff] }
 0x119   : > { %4785 = vmatprep.subr.bf16.mxu1 %v6249_v11  ;;  %v7503_v11 = vld [vmem:[#allocation36_spill] sm:$0xff] }
 0x11a   : > { %964 = vmatmul.mubr.f32.vlgmr.msra.gmra.mrb[0].mxu0 %v6157_v50 }
 0x11b   : > { %4403 = vmatpush1.bf16.msra.mxu0 %v4402_v23  ;;  %2740 = vmatmul.mubr.f32.vlgmr.msra.gmra.mrb[0].mxu1 %v6162_v48 }
 0x11c   : > { %4787 = vmatpush1.bf16.msra.mxu1 %v4402_v23  ;;  %4405 = vmatprep.subr.bf16.mxu0 %v4404_v54  ;;  %v7496_v23 = vld [vmem:[#allocation56_spill] sm:$0xff] }
 0x11d   : > { %4789 = vmatprep.subr.bf16.mxu1 %v4404_v54  ;;  %1098 = vmatprep.mubr.f32.mxu0 %v7445_v29  ;;  %v7505_v54 = vld [vmem:[#allocation38_spill] sm:$0xff]  ;;  %v7516_v46 = vand.u32 4294901760, %v7496_v23 }
 0x11e   : > { %2874 = vmatprep.mubr.f32.mxu1 %v7445_v29 }
 0x11f   : > { %4407 = vmatpush1.bf16.msra.mxu0 %v6261_v3 }
 0x120   : > { %4791 = vmatpush1.bf16.msra.mxu1 %v6261_v3  ;;  %4409 = vmatprep.subr.bf16.mxu0 %v4408_v45  ;;  %v7495_v3 = vld [vmem:[#allocation24_spill] sm:$0xff] }
 0x121   : > { %4793 = vmatprep.subr.bf16.mxu1 %v4408_v45  ;;  %v7508_v45 = vld [vmem:[#allocation41_spill] sm:$0xff] }
 0x123   : > { %4411 = vmatpush1.bf16.msra.mxu0 %v4410_v63 }
 0x124   : > { %4795 = vmatpush1.bf16.msra.mxu1 %v4410_v63  ;;  %4413 = vmatprep.subr.bf16.mxu0 %v6270_v13  ;;  %v7509_v63 = vld [vmem:[#allocation42_spill] sm:$0xff] }
 0x125   : > { %4797 = vmatprep.subr.bf16.mxu1 %v6270_v13  ;;  %v7510_v13 = vld [vmem:[#allocation21_spill] sm:$0xff] }
 0x127   : > { %4415 = vmatpush1.bf16.msra.mxu0 %v6274_v40 }
 0x128   : > { %4799 = vmatpush1.bf16.msra.mxu1 %v6274_v40  ;;  %4417 = vmatprep.subr.bf16.mxu0 %v6278_v31  ;;  %v7511_v40 = vand.u32 4294901760, %v7510_v13  ;;  %v7523_v13 = vld [vmem:[#allocation50_spill] sm:$0xff] }
 0x129   : > { %4801 = vmatprep.subr.bf16.mxu1 %v6278_v31  ;;  %v7494_v31 = vld [vmem:[#allocation55_spill] sm:$0xff] }
 0x12a   : > { %v7515_v16 = vand.u32 4294901760, %v7494_v31 }
 0x12b   : > { %4419 = vmatpush1.bf16.msra.mxu0 %v6282_v21 }
 0x12c   : > { %4803 = vmatpush1.bf16.msra.mxu1 %v6282_v21  ;;  %4421 = vmatprep.subr.bf16.mxu0 %v6287_v41  ;;  %v7512_v21 = vld [vmem:[#allocation22_spill] sm:$0xff] }
 0x12d   : > { %4805 = vmatprep.subr.bf16.mxu1 %v6287_v41  ;;  %v7513_v41 = vand.u32 4294901760, %v7512_v21  ;;  %v565_v21 = vld [vmem:[#allocation11] sm:$0xff] }
 0x12f   : > { %4423 = vmatpush1.bf16.msra.mxu0 %v7488_v59  ;;  %v4464_v44 = vpack.c.bf16 %v7513_v41, %v7511_v40  ;;  %v567_v41 = vld [vmem:[#allocation11 + $0x10] sm:$0xff] }
 0x130   : > { %4807 = vmatpush1.bf16.msra.mxu1 %v7488_v59  ;;  %4425 = vmatprep.subr.bf16.mxu0 %v7489_v61  ;;  %v7521_v59 = vld [vmem:[#allocation48_spill] sm:$0xff] }
 0x131   : > { %4809 = vmatprep.subr.bf16.mxu1 %v7489_v61  ;;  %v448_v61 = vmul.f32 %v447_v49, %v7521_v59  ;;  %v536_v49 = vstv %s6597_s14 }
 0x133   : > { %4427 = vmatpush1.bf16.msra.mxu0 %v7490_v1 }
 0x134   : > { %4811 = vmatpush1.bf16.msra.mxu1 %v7490_v1  ;;  %4429 = vmatprep.subr.bf16.mxu0 %v7491_v15  ;;  %v466_v1 = vstv %s6549_s27  ;;  %s5374_s27 = sshll.u32 %s5462_s15, 4  ;;  %s5375_s27 = int_to_ptr.vmem [resolvable:$false] %s5374_s27 }
 0x135   : > { %4813 = vmatprep.subr.bf16.mxu1 %v7491_v15 }
 0x137   : > { %4431 = vmatpush1.bf16.msra.mxu0 %v7492_v27 }
 0x138   : > { %4815 = vmatpush1.bf16.msra.mxu1 %v7492_v27  ;;  %4433 = vmatprep.subr.bf16.mxu0 %v7493_v30  ;;  %v454_v27 = vmul.f32 %v453_v57, %v7521_v59 }
 0x139   : > { %4817 = vmatprep.subr.bf16.mxu1 %v7493_v30 }
 0x13a   : > { %1101 = vmatmul.mubr.f32.vlgmr.msra.gmra.mrb[0].mxu0 %v7494_v31 }
 0x13b   : > { %4435 = vmatpush1.bf16.msra.mxu0 %v7495_v3  ;;  %2877 = vmatmul.mubr.f32.vlgmr.msra.gmra.mrb[0].mxu1 %v7496_v23 }
 0x13c   : > { %4819 = vmatpush1.bf16.msra.mxu1 %v7495_v3  ;;  %4437 = vmatprep.subr.bf16.mxu0 %v7497_v0 }
 0x13d   : > { %4821 = vmatprep.subr.bf16.mxu1 %v7497_v0  ;;  %1203 = vmatprep.mubr.f32.mxu0 %v7445_v29 }
 0x13e   : > { %2979 = vmatprep.mubr.f32.mxu1 %v7445_v29 }
 0x13f   : > { %4439 = vmatpush1.bf16.msra.mxu0 %v7498_v9 }
 0x140   : > { %4823 = vmatpush1.bf16.msra.mxu1 %v7498_v9  ;;  %4441 = vmatprep.subr.bf16.mxu0 %v7499_v8 }
 0x141   : > { %4825 = vmatprep.subr.bf16.mxu1 %v7499_v8 }
 0x143   : > { %4443 = vmatpush1.bf16.msra.mxu0 %v7500_v24 }
 0x144   : > { %4827 = vmatpush1.bf16.msra.mxu1 %v7500_v24  ;;  %4445 = vmatprep.subr.bf16.mxu0 %v7501_v28 }
 0x145   : > { %4829 = vmatprep.subr.bf16.mxu1 %v7501_v28 }
 0x147   : > { %4447 = vmatpush1.bf16.msra.mxu0 %v7502_v37 }
 0x148   : > { %4831 = vmatpush1.bf16.msra.mxu1 %v7502_v37  ;;  %4449 = vmatprep.subr.bf16.mxu0 %v7503_v11 }
 0x149   : > { %4833 = vmatprep.subr.bf16.mxu1 %v7503_v11 }
 0x14b   : > { %4451 = vmatpush1.bf16.msra.mxu0 %v7504_v60 }
 0x14c   : > { %4835 = vmatpush1.bf16.msra.mxu1 %v7504_v60  ;;  %4453 = vmatprep.subr.bf16.mxu0 %v7505_v54 }
 0x14d   : > { %4837 = vmatprep.subr.bf16.mxu1 %v7505_v54 }
 0x14f   : > { %4455 = vmatpush1.bf16.msra.mxu0 %v7506_v25 }
 0x150   : > { %4839 = vmatpush1.bf16.msra.mxu1 %v7506_v25  ;;  %4457 = vmatprep.subr.bf16.mxu0 %v7507_v10 }
 0x151   : > { %4841 = vmatprep.subr.bf16.mxu1 %v7507_v10 }
 0x153   : > { %4459 = vmatpush1.bf16.msra.mxu0 %v7508_v45 }
 0x154   : > { %4843 = vmatpush1.bf16.msra.mxu1 %v7508_v45  ;;  %4461 = vmatprep.subr.bf16.mxu0 %v7509_v63 }
 0x155   : > { %4845 = vmatprep.subr.bf16.mxu1 %v7509_v63 }
 0x157   : > { %4463 = vmatpush1.bf16.msra.mxu0 %v7514_v18 }
 0x158   : > { %4847 = vmatpush1.bf16.msra.mxu1 %v7514_v18  ;;  %4465 = vmatprep.subr.bf16.mxu0 %v4464_v44 }
 0x159   : > { %4849 = vmatprep.subr.bf16.mxu1 %v4464_v44 }
 0x15a   : > { %1207 = vmatmul.mubr.f32.vlgmr.msra.gmra.mrb[0].mxu0 %v7515_v16 }
 0x15b   : > { %4467 = vmatpush1.bf16.msra.mxu0 %v6316_v32  ;;  %2983 = vmatmul.mubr.f32.vlgmr.msra.gmra.mrb[0].mxu1 %v7516_v46 }
 0x15c   : > { %4851 = vmatpush1.bf16.msra.mxu1 %v6316_v32  ;;  %4469 = vmatprep.subr.bf16.mxu0 %v6322_v19  ;;  %v383_v32 = vstv %s4303_s3  ;;  %s6611_s3 = sld [smem:[#allocation2 + $0xb]] }
 0x15d   : > { %4853 = vmatprep.subr.bf16.mxu1 %v6322_v19  ;;  %1373 = vmatprep.mubr.f32.mxu0 %v7445_v29 }
 0x15e   : > { %3149 = vmatprep.mubr.f32.mxu1 %v7445_v29 }
 0x15f   : > { %4471 = vmatpush1.bf16.msra.mxu0 %v6328_v26 }
 0x160   : > { %4855 = vmatpush1.bf16.msra.mxu1 %v6328_v26  ;;  %4473 = vmatprep.subr.bf16.mxu0 %v6334_v39  ;;  %v7517_v26 = vld [vmem:[#allocation45_spill] sm:$0xff] }
 0x161   : > { %4857 = vmatprep.subr.bf16.mxu1 %v6334_v39  ;;  %v369_v39 = vstv %s4279_s2  ;;  %s6603_s2 = sld [smem:[#allocation2 + $0x10a]] }
 0x162   : > { %v370_v19 = vmul.f32 %v369_v39, %v7517_v26  ;;  %v506_v39 = vstv %s6579_s12 }
 0x163   : > { %4475 = vmatpush1.bf16.msra.mxu0 %v6340_v34 }
 0x164   : > { %4859 = vmatpush1.bf16.msra.mxu1 %v6340_v34  ;;  %4477 = vmatprep.subr.bf16.mxu0 %v6346_v7  ;;  %v371_v34 = vstv %s316_s4  ;;  %s6619_s4 = sld [smem:[#allocation2 + $0x10b]] }
 0x165   : > { %4861 = vmatprep.subr.bf16.mxu1 %v6346_v7  ;;  %v373_v7 = vstv %s4280_s29  ;;  %s4278_s29 = sshll.u32 %s5700_s28, 5 }
 0x166   : > { %v374_v55 = vmul.f32 %v373_v7, %v7518_v53  ;;  %v569_v7 = vld [vmem:[#allocation11 + $0x20] sm:$0xff]  ;;  %s315_s0 = scalar_lea.vmem [#allocation12], %s4278_s29 }
 0x167   : > { %4479 = vmatpush1.bf16.msra.mxu0 %v6352_v62  ;;  %s4133_s7 = sshll.u32 %s315_s0, 4  ;;  %s7141_s7 = int_to_ptr.vmem [resolvable:$true] %s4133_s7 }
 0x168   : > { %4863 = vmatpush1.bf16.msra.mxu1 %v6352_v62  ;;  %4481 = vmatprep.subr.bf16.mxu0 %v6358_v2  ;;  %v384_v62 = vmul.f32 %v383_v32, %v7517_v26  ;;  %v570_v32 = vld [vmem:[#allocation11 + $0x28] sm:$0xff]  ;;  %v572_v26 = vld [vmem:[#allocation11 + $0x38] sm:$0xff]  ;;  %p5377_p2 = scmp.lt.s32.totalorder %s7141_s7, %s5375_s27 }
 0x169   : > { %4865 = vmatprep.subr.bf16.mxu1 %v6358_v2  ;;  %v372_v2 = vadd.f32 %v371_v34, %v370_v19  ;;  %v1487_v19 = vand.u32 4294901760, %v565_v21  ;;  %v1491_v34 = vand.u32 4294901760, %v567_v41 }
 0x16a   : > { %v386_v4 = vadd.f32 %v385_v47, %v384_v62  ;;  %v6607_v62 = vld [vmem:[#allocation11 + $0x30] sm:$0xff] }
 0x16b   : > { %4483 = vmatpush1.bf16.msra.mxu0 %v6365_v56  ;;  %v375_v6 = vadd.f32 %v374_v55, %v372_v2  ;;  %v519_v2 = vstv %s6585_s6 }
 0x16c   : > { %4867 = vmatpush1.bf16.msra.mxu1 %v6365_v56  ;;  %4485 = vmatprep.subr.bf16.mxu0 %v6371_v58  ;;  %v413_v56 = vstv %s6513_s11  ;;  %v389_v14 = vadd.f32 %v388_v5, %v386_v4  ;;  %v1497_v4 = vand.u32 4294901760, %v572_v26  ;;  %v525_v5 = vstv %s6591_s8  ;;  %s4335_s11 = sshll.u32 %s5517_s22, 8  ;;  %s5370_s22 = scalar_lea.vmem %s7141_s7, 512 }
 0x16d   : > { %4869 = vmatprep.subr.bf16.mxu1 %v6371_v58  ;;  %v419_v58 = vstv %s6517_s13  ;;  %s7146_s26 = scalar_lea.hbm %s7195_s5, %s4335_s11  ;;  %p5371_p9 = scmp.ne.s32.totalorder %s7141_s7, %s5370_s22 }
 0x16f   : > { %4487 = vmatpush1.bf16.msra.mxu0 %v6377_v38  ;;  %p5372_p5 = pnand %p5371_p9, %p7614_p13 }
 0x170   : > { %4871 = vmatpush1.bf16.msra.mxu1 %v6377_v38  ;;  %4489 = vmatprep.subr.bf16.mxu0 %v6383_v33  ;;  %v414_v38 = vmul.f32 %v413_v56, %v7519_v12  ;;  %v1493_v56 = vand.u32 4294901760, %v570_v32 }
 0x171   : > { %4873 = vmatprep.subr.bf16.mxu1 %v6383_v33  ;;  %v420_v33 = vmul.f32 %v419_v58, %v7519_v12  ;;  %v1499_v12 = vand.u32 4294901760, %v6607_v62  ;;  %p5373_p10 = pneg %p5372_p5 }
 0x172   : > { %v415_v22 = vadd.f32 %v414_v38, %v375_v6  ;;  %v1495_v6 = vand.u32 4294901760, %v569_v7  ;;  %v574_v38 = vld [vmem:[#allocation11 + $0x48] sm:$0xff]  ;;  %v6640_v57 = vpack.c.bf16 %v1497_v4, %v1493_v56 }
 0x173   : > { %4491 = vmatpush1.bf16.msra.mxu0 %v6391_v35 }
 0x174   : > { %4875 = vmatpush1.bf16.msra.mxu1 %v6391_v35  ;;  %4493 = vmatprep.subr.bf16.mxu0 %v6397_v17  ;;  %v7520_v35 = vld [vmem:[#allocation47_spill] sm:$0xff]  ;;  %7526 = vst [vmem:[#allocation31_spill] sm:$0xff] %v6640_v57 }
 0x175   : > { %4877 = vmatprep.subr.bf16.mxu1 %v6397_v17  ;;  %v431_v36 = vmul.f32 %v430_v43, %v7520_v35  ;;  %v421_v17 = vadd.f32 %v420_v33, %v389_v14  ;;  %v437_v51 = vmul.f32 %v436_v20, %v7520_v35  ;;  %v576_v43 = vld [vmem:[#allocation11 + $0x58] sm:$0xff]  ;;  %v6628_v14 = vpack.c.bf16 %v1491_v34, %v1487_v19  ;;  %v7525_v20 = vld [vmem:[#allocation52_spill] sm:$0xff] }
 0x176   : > { %v6632_v35 = vsub.f32 %v565_v21, %v1487_v19  ;;  %v1505_v59 = vand.u32 4294901760, %v576_v43 }
 0x177   : > { %4495 = vmatpush1.bf16.msra.mxu0 %v6403_v42  ;;  %v438_v15 = vadd.f32 %v437_v51, %v421_v17  ;;  %v526_v51 = vmul.f32 %v525_v5, %v7525_v20 }
 0x178   : > { %4879 = vmatpush1.bf16.msra.mxu1 %v6403_v42  ;;  %4497 = vmatprep.subr.bf16.mxu0 %v7493_v30  ;;  %v432_v42 = vadd.f32 %v431_v36, %v415_v22  ;;  %v520_v22 = vmul.f32 %v519_v2, %v7525_v20  ;;  %v6634_v36 = vld [vmem:[#allocation11 + $0x50] sm:$0xff]  ;;  %v6673_v19 = vsub.f32 %v576_v43, %v1505_v59  ;;  %v586_v2 = vld [vmem:[#allocation11 + $0xa8] sm:$0xff] }
 0x179   : > { %4881 = vmatprep.subr.bf16.mxu1 %v7493_v30  ;;  %v472_v30 = vstv %s6555_s1  ;;  %s5376_s1 = scalar_lea.vmem %s5375_s27, 1024 }
 0x17a   : > { %1375 = vmatmul.mubr.f32.vlgmr.msra.gmra.mrb[0].mxu0 %v6157_v50  ;;  %v449_v31 = vadd.f32 %v448_v61, %v432_v42  ;;  %v1501_v42 = vand.u32 4294901760, %v574_v38  ;;  %v542_v61 = vstv %s6603_s2  ;;  %p5378_p4 = scmp.lt.s32.totalorder %s5376_s1, %s5370_s22 }
 0x17b   : > { %4499 = vmatpush1.bf16.msra.mxu0 %v7495_v3  ;;  %3151 = vmatmul.mubr.f32.vlgmr.msra.gmra.mrb[0].mxu1 %v6162_v48 }
 0x17c   : > { %4883 = vmatpush1.bf16.msra.mxu1 %v7495_v3  ;;  %4501 = vmatprep.subr.bf16.mxu0 %v7497_v0  ;;  %v7522_v3 = vld [vmem:[#allocation49_spill] sm:$0xff]  ;;  %p5379_p1 = por %p5378_p4, %p5377_p2 }
 0x17d   : > { %4885 = vmatprep.subr.bf16.mxu1 %v7497_v0  ;;  %1477 = vmatprep.mubr.f32.mxu0 %v7445_v29  ;;  %v467_v23 = vmul.f32 %v466_v1, %v7522_v3  ;;  %v483_v0 = vstv %s6561_s9  ;;  %v6644_v1 = vsub.f32 %v567_v41, %v1491_v34 }
 0x17e   : > { %3253 = vmatprep.mubr.f32.mxu1 %v7445_v29  ;;  %v484_v40 = vmul.f32 %v483_v0, %v7523_v13  ;;  %v577_v0 = vld [vmem:[#allocation11 + $0x60] sm:$0xff]  ;;  %p5380_p6 = pnand %p5379_p1, %p5373_p10 }
 0x17f   : > { %4503 = vmatpush1.bf16.msra.mxu0 %v7498_v9 }
 0x180   : > { %4887 = vmatpush1.bf16.msra.mxu1 %v7498_v9  ;;  %4505 = vmatprep.subr.bf16.mxu0 %v7499_v8  ;;  %v455_v9 = vadd.f32 %v454_v27, %v438_v15  ;;  %v6646_v15 = vsub.f32 %v570_v32, %v1493_v56  ;;  %v6648_v27 = vsub.f32 %v572_v26, %v1497_v4  ;;  %v581_v32 = vld [vmem:[#allocation11 + $0x80] sm:$0xff]  ;;  %v583_v26 = vld [vmem:[#allocation11 + $0x90] sm:$0xff] }
 0x181   : > { %4889 = vmatprep.subr.bf16.mxu1 %v7499_v8  ;;  %v473_v8 = vmul.f32 %v472_v30, %v7522_v3  ;;  %v6650_v30 = vpack.c.bf16 %v1499_v12, %v1495_v6 }
 0x183   : > { %4507 = vmatpush1.bf16.msra.mxu0 %v7500_v24  ;;  %v474_v44 = vadd.f32 %v473_v8, %v455_v9  ;;  %7527 = vst [vmem:[#allocation23_spill] sm:$0xff] %v6650_v30  ;;  %v579_v9 = vld [vmem:[#allocation11 + $0x70] sm:$0xff] }
 0x184   : > { %4891 = vmatpush1.bf16.msra.mxu1 %v7500_v24  ;;  %4509 = vmatprep.subr.bf16.mxu0 %v7501_v28  ;;  %v489_v24 = vstv %s6567_s24 }
 0x185   : > { %4893 = vmatprep.subr.bf16.mxu1 %v7501_v28  ;;  %v566_v28 = vld [vmem:[#allocation11 + $0x8] sm:$0xff]  ;;  %v490_v16 = vmul.f32 %v489_v24, %v7523_v13 }
 0x186   : > { %v7528_v24 = vld [vmem:[#allocation53_spill] sm:$0xff] }
 0x187   : > { %4511 = vmatpush1.bf16.msra.mxu0 %v7502_v37  ;;  %v491_v53 = vadd.f32 %v490_v16, %v474_v44  ;;  %v584_v44 = vld [vmem:[#allocation11 + $0x98] sm:$0xff]  ;;  %v559_v16 = vstv %s6619_s4 }
 0x188   : > { %4895 = vmatpush1.bf16.msra.mxu1 %v7502_v37  ;;  %4513 = vmatprep.subr.bf16.mxu0 %v7503_v11  ;;  %v568_v37 = vld [vmem:[#allocation11 + $0x18] sm:$0xff] }
 0x189   : > { %4897 = vmatprep.subr.bf16.mxu1 %v7503_v11  ;;  %v468_v11 = vadd.f32 %v467_v23, %v449_v31  ;;  %v1489_v46 = vand.u32 4294901760, %v568_v37  ;;  %v578_v31 = vld [vmem:[#allocation11 + $0x68] sm:$0xff]  ;;  %v1507_v23 = vand.u32 4294901760, %v6634_v36 }
 0x18a   : > { %v1509_v21 = vand.u32 4294901760, %v578_v31 }
 0x18b   : > { %4515 = vmatpush1.bf16.msra.mxu0 %v7504_v60  ;;  %v485_v47 = vadd.f32 %v484_v40, %v468_v11  ;;  %v553_v11 = vstv %s6611_s3  ;;  %v543_v40 = vmul.f32 %v542_v61, %v7528_v24 }
 0x18c   : > { %4899 = vmatpush1.bf16.msra.mxu1 %v7504_v60  ;;  %4517 = vmatprep.subr.bf16.mxu0 %v7505_v54  ;;  %v500_v60 = vstv %s6573_s10  ;;  %v6691_v43 = vsub.f32 %v578_v31, %v1509_v21 }
 0x18d   : > { %4901 = vmatprep.subr.bf16.mxu1 %v7505_v54  ;;  %v1485_v54 = vand.u32 4294901760, %v566_v28 }
 0x18f   : > { %4519 = vmatpush1.bf16.msra.mxu0 %v7506_v25  ;;  %v6623_v58 = vsub.f32 %v566_v28, %v1485_v54  ;;  %v537_v28 = vmul.f32 %v536_v49, %v7528_v24  ;;  %v587_v49 = vld [vmem:[#allocation11 + $0xb0] sm:$0xff] }
 0x190   : > { %4903 = vmatpush1.bf16.msra.mxu1 %v7506_v25  ;;  %4521 = vmatprep.subr.bf16.mxu0 %v7507_v10  ;;  %v7524_v25 = vld [vmem:[#allocation51_spill] sm:$0xff] }
 0x191   : > { %4905 = vmatprep.subr.bf16.mxu1 %v7507_v10  ;;  %v501_v52 = vmul.f32 %v500_v60, %v7524_v25  ;;  %v507_v55 = vmul.f32 %v506_v39, %v7524_v25  ;;  %v6617_v10 = vpack.c.bf16 %v1489_v46, %v1485_v54  ;;  %v582_v60 = vld [vmem:[#allocation11 + $0x88] sm:$0xff]  ;;  %v6670_v54 = vsub.f32 %v574_v38, %v1501_v42 }
 0x192   : > { %v1515_v39 = vand.u32 4294901760, %v579_v9  ;;  %v6689_v38 = vsub.f32 %v6634_v36, %v1507_v23 }
 0x193   : > { %4523 = vmatpush1.bf16.msra.mxu0 %v7508_v45  ;;  %v502_v33 = vadd.f32 %v501_v52, %v485_v47  ;;  %v508_v17 = vadd.f32 %v507_v55, %v491_v53  ;;  %v7531_v47 = vld [vmem:[#allocation54_spill] sm:$0xff]  ;;  %v1521_v52 = vand.u32 4294901760, %v584_v44  ;;  %v588_v53 = vld [vmem:[#allocation11 + $0xb8] sm:$0xff] }
 0x194   : > { %4907 = vmatpush1.bf16.msra.mxu1 %v7508_v45  ;;  %4525 = vmatprep.subr.bf16.mxu0 %v7509_v63  ;;  %v6626_v45 = vsub.f32 %v568_v37, %v1489_v46  ;;  %v6657_v37 = vsub.f32 %v569_v7, %v1495_v6  ;;  %v1511_v46 = vand.u32 4294901760, %v577_v0  ;;  %v554_v25 = vmul.f32 %v553_v11, %v7531_v47 }
 0x195   : > { %4909 = vmatprep.subr.bf16.mxu1 %v7509_v63  ;;  %v573_v63 = vld [vmem:[#allocation11 + $0x40] sm:$0xff]  ;;  %v521_v8 = vadd.f32 %v520_v22, %v502_v33  ;;  %v527_v13 = vadd.f32 %v526_v51, %v508_v17  ;;  %v560_v56 = vmul.f32 %v559_v16, %v7531_v47  ;;  %v1519_v6 = vand.u32 4294901760, %v581_v32 }
 0x196   : > { %v1503_v3 = vand.u32 4294901760, %v573_v63  ;;  %v6695_v20 = vpack.c.bf16 %v1515_v39, %v1511_v46  ;;  %v585_v22 = vld [vmem:[#allocation11 + $0xa0] sm:$0xff]  ;;  %v6697_v17 = vsub.f32 %v577_v0, %v1511_v46  ;;  %v1529_v51 = vand.u32 4294901760, %v588_v53 }
 0x197   : > { %4527 = vmatpush1.bf16.msra.mxu0 %v7514_v18  ;;  %v538_v7 = vadd.f32 %v537_v28, %v521_v8  ;;  %v544_v55 = vadd.f32 %v543_v40, %v527_v13  ;;  %v6710_v0 = vsub.f32 %v584_v44, %v1521_v52  ;;  %v1527_v28 = vand.u32 4294901760, %v585_v22 }
 0x198   : > { %4911 = vmatpush1.bf16.msra.mxu1 %v7514_v18  ;;  %4529 = vmatprep.subr.bf16.mxu0 %v6617_v10  ;;  %v580_v18 = vld [vmem:[#allocation11 + $0x78] sm:$0xff]  ;;  %v6675_v34 = vpack.c.bf16 %v1507_v23, %v1503_v3  ;;  %v6683_v4 = vsub.f32 %v573_v63, %v1503_v3  ;;  %7533 = vst [vmem:[#allocation30_spill] sm:$0xff] %v6695_v20  ;;  %v1525_v63 = vand.u32 4294901760, %v586_v2  ;;  %v6706_v23 = vld [vmem:[#allocation11 + $0xd0] sm:$0xff]  ;;  %v1531_v11 = vand.u32 4294901760, %v587_v49 }
 0x199   : > { %4913 = vmatprep.subr.bf16.mxu1 %v6617_v10  ;;  %v1513_v41 = vand.u32 4294901760, %v580_v18  ;;  %v555_v61 = vadd.f32 %v554_v25, %v538_v7  ;;  %v6700_v3 = vsub.f32 %v579_v9, %v1515_v39  ;;  %v561_v8 = vadd.f32 %v560_v56, %v544_v55  ;;  %v6748_v56 = vld [vmem:[#allocation11 + $0xe8] sm:$0xff] }
 0x19a   : > { %1479 = vmatmul.mubr.f32.vlgmr.msra.gmra.mrb[0].mxu0 %v6157_v50  ;;  %v6663_v50 = vpack.c.bf16 %v1505_v59, %v1501_v42  ;;  %7530 = vst [vmem:[#allocation27_spill] sm:$0xff] %v6675_v34  ;;  %v590_v42 = vld [vmem:[#allocation11 + $0xc8] sm:$0xff]  ;;  %v592_v59 = vld [vmem:[#allocation11 + $0xd8] sm:$0xff]  ;;  %v6715_v9 = vsub.f32 %v581_v32, %v1519_v6  ;;  %v7319_v16 = vand.u32 4294901760, %v6706_v23  ;;  %v6725_v44 = vsub.f32 %v586_v2, %v1525_v63 }
 0x19b   : > { %4531 = vmatpush1.bf16.msra.mxu0 %v6628_v14  ;;  %3255 = vmatmul.mubr.f32.vlgmr.msra.gmra.mrb[0].mxu1 %v6162_v48  ;;  %v6668_v48 = vsub.f32 %v6607_v62, %v1499_v12  ;;  %v1517_v62 = vand.u32 4294901760, %v582_v60  ;;  %v6685_v5 = vpack.c.bf16 %v1513_v41, %v1509_v21  ;;  %v1523_v12 = vand.u32 4294901760, %v583_v26 }
 0x19c   : > { %4915 = vmatpush1.bf16.msra.mxu1 %v6628_v14  ;;  %4533 = vmatprep.subr.bf16.mxu0 %v6640_v57  ;;  %7529 = vst [vmem:[#allocation25_spill] sm:$0xff] %v6663_v50  ;;  %v6693_v33 = vsub.f32 %v580_v18, %v1513_v41  ;;  %v589_v18 = vld [vmem:[#allocation11 + $0xc0] sm:$0xff]  ;;  %v1533_v40 = vand.u32 4294901760, %v590_v42  ;;  %v1537_v21 = vand.u32 4294901760, %v592_v59  ;;  %v6719_v41 = vpack.c.bf16 %v1529_v51, %v1525_v63 }
 0x19d   : > { %4917 = vmatprep.subr.bf16.mxu1 %v6640_v57  ;;  %1581 = vmatprep.mubr.f32.mxu0 %v7445_v29  ;;  %7532 = vst [vmem:[#allocation28_spill] sm:$0xff] %v6685_v5  ;;  %v6702_v36 = vpack.c.bf16 %v1521_v52, %v1517_v62  ;;  %v6704_v31 = vsub.f32 %v582_v60, %v1517_v62  ;;  %v1535_v60 = vand.u32 4294901760, %v589_v18  ;;  %v6722_v46 = vand.u32 4294901760, %v555_v61 }
 0x19e   : > { %3357 = vmatprep.mubr.f32.mxu1 %v7445_v29  ;;  %v6712_v24 = vpack.c.bf16 %v1523_v12, %v1519_v6  ;;  %v6717_v13 = vsub.f32 %v583_v26, %v1523_v12  ;;  %7536 = vst [vmem:[#allocation24_spill] sm:$0xff] %v6719_v41  ;;  %v7318_v39 = vand.u32 4294901760, %v6623_v58  ;;  %v7317_v32 = vand.u32 4294901760, %v6626_v45  ;;  %v6750_v6 = vld [vmem:[#allocation11 + $0xf8] sm:$0xff]  ;;  %v6756_v12 = vld [vmem:[#allocation11 + $0xe0] sm:$0xff] }
 0x19f   : > { %4535 = vmatpush1.bf16.msra.mxu0 %v6650_v30  ;;  %7534 = vst [vmem:[#allocation20_spill] sm:$0xff] %v6702_v36  ;;  %v6729_v7 = vand.u32 4294901760, %v561_v8  ;;  %v6733_v26 = vsub.f32 %v588_v53, %v1529_v51  ;;  %v6735_v47 = vpack.c.bf16 %v1531_v11, %v1527_v28  ;;  %v6737_v25 = vsub.f32 %v585_v22, %v1527_v28  ;;  %v6758_v22 = vld [vmem:[#allocation11 + $0xf0] sm:$0xff] }
 0x1a0   : > { %4919 = vmatpush1.bf16.msra.mxu1 %v6650_v30  ;;  %4537 = vmatprep.subr.bf16.mxu0 %v6663_v50  ;;  %7535 = vst [vmem:[#allocation55_spill] sm:$0xff] %v6712_v24  ;;  %v6740_v62 = vsub.f32 %v587_v49, %v1531_v11  ;;  %v6742_v52 = vpack.c.bf16 %v1537_v21, %v1533_v40  ;;  %v7320_v63 = vand.u32 4294901760, %v6632_v35  ;;  %v7321_v51 = vand.u32 4294901760, %v6644_v1 }
 0x1a1   : > { %4921 = vmatprep.subr.bf16.mxu1 %v6663_v50  ;;  %7537 = vst [vmem:[#allocation56_spill] sm:$0xff] %v6735_v47  ;;  %v6744_v2 = vsub.f32 %v590_v42, %v1533_v40  ;;  %v6746_v55 = vsub.f32 %v592_v59, %v1537_v21  ;;  %v6754_v53 = vpack.c.bf16 %v7319_v16, %v1535_v60 }
 0x1a2   : > { %7538 = vst [vmem:[#allocation26_spill] sm:$0xff] %v6742_v52  ;;  %v6761_v49 = vsub.f32 %v555_v61, %v6722_v46  ;;  %v6766_v42 = vsub.f32 %v589_v18, %v1535_v60  ;;  %v1596_v59 = vsub.f32 %v6623_v58, %v7318_v39  ;;  %v1608_v28 = vsub.f32 %v6626_v45, %v7317_v32 }
 0x1a3   : > { %4539 = vmatpush1.bf16.msra.mxu0 %v6675_v34  ;;  %7539 = vst [vmem:[#allocation29_spill] sm:$0xff] %v6754_v53  ;;  %v6775_v11 = vsub.f32 %v561_v8, %v6729_v7  ;;  %v7326_v61 = vand.u32 4294901760, %v6748_v56  ;;  %v1602_v18 = vsub.f32 %v6632_v35, %v7320_v63  ;;  %v1614_v21 = vsub.f32 %v6644_v1, %v7321_v51 }
 0x1a4   : > { %4923 = vmatpush1.bf16.msra.mxu1 %v6675_v34  ;;  %4541 = vmatprep.subr.bf16.mxu0 %v6685_v5  ;;  %v1597_v60 = vand.u32 4294901760, %v1596_v59  ;;  %v1609_v32 = vand.u32 4294901760, %v1608_v28  ;;  %v7540_v63 = vand.u32 4294901760, %v6750_v6  ;;  %v7542_v51 = vand.u32 4294901760, %v6646_v15 }
 0x1a5   : > { %4925 = vmatprep.subr.bf16.mxu1 %v6685_v5  ;;  %v7543_v59 = vand.u32 4294901760, %v6648_v27  ;;  %v7544_v39 = vand.u32 4294901760, %v6657_v37 }
 0x1a6   : > { %v6805_v16 = vpack.c.bf16 %v7540_v63, %v7326_v61  ;;  %v1620_v40 = vsub.f32 %v6646_v15, %v7542_v51  ;;  %v7546_v51 = vand.u32 4294901760, %v6761_v49  ;;  %v4560_v63 = vpack.c.bf16 %v1609_v32, %v1597_v60 }
 0x1a7   : > { %4543 = vmatpush1.bf16.msra.mxu0 %v6695_v20  ;;  %v1632_v28 = vsub.f32 %v6648_v27, %v7543_v59  ;;  %v1626_v8 = vsub.f32 %v6657_v37, %v7544_v39  ;;  %v1615_v59 = vand.u32 4294901760, %v1614_v21  ;;  %v7548_v39 = vand.u32 4294901760, %v6756_v12 }
 0x1a8   : > { %4927 = vmatpush1.bf16.msra.mxu1 %v6695_v20  ;;  %4545 = vmatprep.subr.bf16.mxu0 %v6702_v36  ;;  %7541 = vst [vmem:[#allocation32_spill] sm:$0xff] %v6805_v16  ;;  %v7550_v61 = vand.u32 4294901760, %v6775_v11 }
 0x1a9   : > { %4929 = vmatprep.subr.bf16.mxu1 %v6702_v36  ;;  %v1603_v36 = vand.u32 4294901760, %v1602_v18  ;;  %v7551_v18 = vand.u32 4294901760, %v6673_v19  ;;  %v1627_v32 = vand.u32 4294901760, %v1626_v8  ;;  %v7350_v8 = vand.u32 4294901760, %v6710_v0 }
 0x1aa   : > { %v3361_v34 = vsub.f32 %v6775_v11, %v7550_v61  ;;  %v7552_v61 = vand.u32 4294901760, %v6683_v4 }
 0x1ab   : > { %4547 = vmatpush1.bf16.msra.mxu0 %v6712_v24  ;;  %v1656_v21 = vsub.f32 %v6673_v19, %v7551_v18  ;;  %v7553_v18 = vand.u32 4294901760, %v6689_v38  ;;  %v4562_v57 = vpack.c.bf16 %v1615_v59, %v1603_v36  ;;  %v7555_v36 = vand.u32 4294901760, %v6693_v33 }
 0x1ac   : > { %4931 = vmatpush1.bf16.msra.mxu1 %v6712_v24  ;;  %4549 = vmatprep.subr.bf16.mxu0 %v6719_v41  ;;  %v1585_v24 = vsub.f32 %v6761_v49, %v7546_v51  ;;  %v1633_v51 = vand.u32 4294901760, %v1632_v28  ;;  %v7349_v28 = vand.u32 4294901760, %v6697_v17 }
 0x1ad   : > { %4933 = vmatprep.subr.bf16.mxu1 %v6719_v41  ;;  %v1680_v59 = vsub.f32 %v6693_v33, %v7555_v36 }
 0x1ae   : > { %v1586_v30 = vand.u32 4294901760, %v1585_v24  ;;  %v7554_v24 = vand.u32 4294901760, %v6691_v43 }
 0x1af   : > { %4551 = vmatpush1.bf16.msra.mxu0 %v6735_v47 }
 0x1b0   : > { %4935 = vmatpush1.bf16.msra.mxu1 %v6735_v47  ;;  %4553 = vmatprep.subr.bf16.mxu0 %v6742_v52  ;;  %v7545_v47 = vand.u32 4294901760, %v6668_v48 }
 0x1b1   : > { %4937 = vmatprep.subr.bf16.mxu1 %v6742_v52  ;;  %v7547_v52 = vand.u32 4294901760, %v6670_v54 }
 0x1b2   : > { %v1638_v41 = vsub.f32 %v6668_v48, %v7545_v47  ;;  %v7549_v47 = vand.u32 4294901760, %v6758_v22 }
 0x1b3   : > { %v1644_v20 = vsub.f32 %v6670_v54, %v7547_v52  ;;  %4555 = vmatpush1.bf16.msra.mxu0 %v6754_v53  ;;  %v1621_v52 = vand.u32 4294901760, %v1620_v40 }
 0x1b4   : > { %v6833_v5 = vpack.c.bf16 %v7549_v47, %v7548_v39  ;;  %4939 = vmatpush1.bf16.msra.mxu1 %v6754_v53  ;;  %4557 = vmatprep.subr.bf16.mxu0 %v6805_v16  ;;  %v1639_v60 = vand.u32 4294901760, %v1638_v41  ;;  %v1650_v47 = vsub.f32 %v6683_v4, %v7552_v61  ;;  %v1662_v53 = vsub.f32 %v6689_v38, %v7553_v18 }
 0x1b5   : > { %4941 = vmatprep.subr.bf16.mxu1 %v6805_v16  ;;  %v1645_v40 = vand.u32 4294901760, %v1644_v20  ;;  %v3362_v39 = vand.u32 4294901760, %v3361_v34  ;;  %v4564_v61 = vpack.c.bf16 %v1633_v51, %v1621_v52  ;;  %v1657_v16 = vand.u32 4294901760, %v1656_v21 }
 0x1b6   : > { %v1668_v20 = vsub.f32 %v6691_v43, %v7554_v24  ;;  %v4566_v34 = vpack.c.bf16 %v1639_v60, %v1627_v32  ;;  %v1651_v18 = vand.u32 4294901760, %v1650_v47  ;;  %v1663_v50 = vand.u32 4294901760, %v1662_v53 }
 0x1b7   : > { %4559 = vmatpush1.bf16.msra.mxu0 %v6833_v5  ;;  %v7351_v41 = vand.u32 4294901760, %v6715_v9  ;;  %v1674_v52 = vsub.f32 %v6697_v17, %v7349_v28  ;;  %v7557_v53 = vand.u32 4294901760, %v6704_v31  ;;  %v1704_v60 = vsub.f32 %v6710_v0, %v7350_v8 }
 0x1b8   : > { %4943 = vmatpush1.bf16.msra.mxu1 %v6833_v5  ;;  %4561 = vmatprep.subr.bf16.mxu0 %v4560_v63  ;;  %v7558_v47 = vand.u32 4294901760, %v6706_v23  ;;  %v1669_v28 = vand.u32 4294901760, %v1668_v20  ;;  %v1681_v24 = vand.u32 4294901760, %v1680_v59 }
 0x1b9   : > { %4945 = vmatprep.subr.bf16.mxu1 %v4560_v63  ;;  %v7556_v63 = vand.u32 4294901760, %v6700_v3  ;;  %v1698_v8 = vsub.f32 %v6715_v9, %v7351_v41  ;;  %v1675_v20 = vand.u32 4294901760, %v1674_v52  ;;  %v7565_v52 = vand.u32 4294901760, %v6758_v22 }
 0x1ba   : > { %1587 = vmatmul.mubr.f32.vlgmr.msra.gmra.mrb[0].mxu0 %v1586_v30  ;;  %v1692_v30 = vsub.f32 %v6704_v31, %v7557_v53  ;;  %v6883_v36 = vsub.f32 %v6706_v23, %v7558_v47  ;;  %v4570_v53 = vpack.c.bf16 %v1663_v50, %v1651_v18  ;;  %v1705_v47 = vand.u32 4294901760, %v1704_v60 }
 0x1bb   : > { %4563 = vmatpush1.bf16.msra.mxu0 %v4562_v57  ;;  %3363 = vmatmul.mubr.f32.vlgmr.msra.gmra.mrb[0].mxu1 %v3362_v39  ;;  %v1686_v32 = vsub.f32 %v6700_v3, %v7556_v63  ;;  %v4568_v39 = vpack.c.bf16 %v1657_v16, %v1645_v40  ;;  %v7559_v63 = vand.u32 4294901760, %v6748_v56  ;;  %v7561_v16 = vand.u32 4294901760, %v6725_v44 }
 0x1bc   : > { %4947 = vmatpush1.bf16.msra.mxu1 %v4562_v57  ;;  %4565 = vmatprep.subr.bf16.mxu0 %v4564_v61  ;;  %v7560_v57 = vand.u32 4294901760, %v6717_v13  ;;  %v1693_v18 = vand.u32 4294901760, %v1692_v30  ;;  %v1745_v41 = vand.u32 4294901760, %v6766_v42 }
 0x1bd   : > { %v6888_v51 = vsub.f32 %v6748_v56, %v7559_v63  ;;  %4949 = vmatprep.subr.bf16.mxu1 %v4564_v61  ;;  %1817 = vmatprep.mubr.f32.mxu0 %v7445_v29  ;;  %v1716_v40 = vsub.f32 %v6725_v44, %v7561_v16  ;;  %v7562_v56 = vand.u32 4294901760, %v6733_v26  ;;  %v1687_v59 = vand.u32 4294901760, %v1686_v32 }
 0x1be   : > { %v1710_v23 = vsub.f32 %v6717_v13, %v7560_v57  ;;  %3593 = vmatprep.mubr.f32.mxu1 %v7445_v29  ;;  %v7563_v63 = vand.u32 4294901760, %v6750_v6  ;;  %v4572_v16 = vpack.c.bf16 %v1681_v24, %v1669_v28  ;;  %v7564_v61 = vand.u32 4294901760, %v6756_v12 }
 0x1bf   : > { %v1728_v50 = vsub.f32 %v6733_v26, %v7562_v56  ;;  %4567 = vmatpush1.bf16.msra.mxu0 %v4566_v34  ;;  %v6921_v32 = vsub.f32 %v6758_v22, %v7565_v52  ;;  %v1717_v30 = vand.u32 4294901760, %v1716_v40  ;;  %v1757_v22 = vand.u32 4294901760, %v6883_v36 }
 0x1c0   : > { %v6909_v57 = vsub.f32 %v6750_v6, %v7563_v63  ;;  %4951 = vmatpush1.bf16.msra.mxu1 %v4566_v34  ;;  %4569 = vmatprep.subr.bf16.mxu0 %v4568_v39  ;;  %v6916_v21 = vsub.f32 %v6756_v12, %v7564_v61  ;;  %v1699_v6 = vand.u32 4294901760, %v1698_v8  ;;  %v7566_v34 = vand.u32 4294901760, %v6737_v25 }
 0x1c1   : > { %4953 = vmatprep.subr.bf16.mxu1 %v4568_v39  ;;  %v1711_v24 = vand.u32 4294901760, %v1710_v23  ;;  %v1729_v60 = vand.u32 4294901760, %v1728_v50  ;;  %v7567_v63 = vand.u32 4294901760, %v6740_v62  ;;  %v4574_v12 = vpack.c.bf16 %v1687_v59, %v1675_v20 }
 0x1c2   : > { %v1722_v28 = vsub.f32 %v6737_v25, %v7566_v34  ;;  %v4576_v61 = vpack.c.bf16 %v1705_v47, %v1693_v18  ;;  %v7568_v8 = vand.u32 4294901760, %v6744_v2  ;;  %v7569_v23 = vand.u32 4294901760, %v6746_v55 }
 0x1c3   : > { %v1734_v56 = vsub.f32 %v6740_v62, %v7567_v63  ;;  %4571 = vmatpush1.bf16.msra.mxu0 %v4570_v53  ;;  %v7352_v50 = vand.u32 4294901760, %v6888_v51  ;;  %v1775_v52 = vand.u32 4294901760, %v6909_v57  ;;  %v4578_v20 = vpack.c.bf16 %v1711_v24, %v1699_v6 }
 0x1c4   : > { %4955 = vmatpush1.bf16.msra.mxu1 %v4570_v53  ;;  %4573 = vmatprep.subr.bf16.mxu0 %v4572_v16  ;;  %v1740_v39 = vsub.f32 %v6744_v2, %v7568_v8  ;;  %v1752_v40 = vsub.f32 %v6746_v55, %v7569_v23  ;;  %v4580_v59 = vpack.c.bf16 %v1729_v60, %v1717_v30  ;;  %v1723_v18 = vand.u32 4294901760, %v1722_v28 }
 0x1c5   : > { %4957 = vmatprep.subr.bf16.mxu1 %v4572_v16  ;;  %v1735_v47 = vand.u32 4294901760, %v1734_v56  ;;  %v1746_v53 = vsub.f32 %v6766_v42, %v1745_v41  ;;  %v1758_v34 = vsub.f32 %v6883_v36, %v1757_v22  ;;  %v7354_v63 = vand.u32 4294901760, %v6916_v21 }
 0x1c6   : > { %v7353_v8 = vand.u32 4294901760, %v6921_v32  ;;  %v1741_v16 = vand.u32 4294901760, %v1740_v39  ;;  %v1753_v6 = vand.u32 4294901760, %v1752_v40  ;;  %v1764_v56 = vsub.f32 %v6888_v51, %v7352_v50 }
 0x1c7   : > { %4575 = vmatpush1.bf16.msra.mxu0 %v4574_v12  ;;  %v1776_v28 = vsub.f32 %v6909_v57, %v1775_v52  ;;  %v4582_v24 = vpack.c.bf16 %v1735_v47, %v1723_v18  ;;  %v1747_v30 = vand.u32 4294901760, %v1746_v53  ;;  %v1759_v60 = vand.u32 4294901760, %v1758_v34 }
 0x1c8   : > { %4959 = vmatpush1.bf16.msra.mxu1 %v4574_v12  ;;  %4577 = vmatprep.subr.bf16.mxu0 %v4576_v61  ;;  %v1770_v12 = vsub.f32 %v6916_v21, %v7354_v63  ;;  %v1782_v39 = vsub.f32 %v6921_v32, %v7353_v8  ;;  %v4584_v23 = vpack.c.bf16 %v1753_v6, %v1741_v16  ;;  %v1765_v40 = vand.u32 4294901760, %v1764_v56 }
 0x1c9   : > { %4961 = vmatprep.subr.bf16.mxu1 %v4576_v61  ;;  %v1777_v50 = vand.u32 4294901760, %v1776_v28  ;;  %v4586_v61 = vpack.c.bf16 %v1759_v60, %v1747_v30  ;;  %v4596_v16 = vpack.c.bf16 %v6648_v27, %v6646_v15  ;;  %v4600_v6 = vpack.c.bf16 %v6673_v19, %v6670_v54 }
 0x1ca   : > { %v1771_v18 = vand.u32 4294901760, %v1770_v12  ;;  %v1783_v47 = vand.u32 4294901760, %v1782_v39  ;;  %v4602_v56 = vpack.c.bf16 %v6689_v38, %v6683_v4  ;;  %v4604_v28 = vpack.c.bf16 %v6693_v33, %v6691_v43 }
 0x1cb   : > { %4579 = vmatpush1.bf16.msra.mxu0 %v4578_v20  ;;  %v4588_v53 = vpack.c.bf16 %v1777_v50, %v1765_v40  ;;  %v4598_v50 = vpack.c.bf16 %v6668_v48, %v6657_v37  ;;  %v4608_v30 = vpack.c.bf16 %v6710_v0, %v6704_v31  ;;  %v4610_v60 = vpack.c.bf16 %v6717_v13, %v6715_v9 }
 0x1cc   : > { %4963 = vmatpush1.bf16.msra.mxu1 %v4578_v20  ;;  %4581 = vmatprep.subr.bf16.mxu0 %v4580_v59  ;;  %v4590_v34 = vpack.c.bf16 %v1783_v47, %v1771_v18  ;;  %v4592_v20 = vpack.c.bf16 %v6626_v45, %v6623_v58  ;;  %v4612_v12 = vpack.c.bf16 %v6733_v26, %v6725_v44  ;;  %v7570_v47 = vld [vmem:[#allocation31_spill] sm:$0xff]  ;;  %v7587_v8 = vand.u32 4294901760, %v6646_v15 }
 0x1cd   : > { %4965 = vmatprep.subr.bf16.mxu1 %v4580_v59  ;;  %v4594_v59 = vpack.c.bf16 %v6644_v1, %v6632_v35  ;;  %v4614_v39 = vpack.c.bf16 %v6740_v62, %v6737_v25  ;;  %v4618_v40 = vpack.c.bf16 %v6883_v36, %v6766_v42  ;;  %v4622_v18 = vpack.c.bf16 %v6921_v32, %v6916_v21 }
 0x1ce   : > { %v7588_v63 = vand.u32 4294901760, %v6648_v27  ;;  %v7593_v15 = vand.u32 4294901760, %v6670_v54  ;;  %v7594_v27 = vand.u32 4294901760, %v6673_v19  ;;  %v7598_v54 = vand.u32 4294901760, %v6693_v33 }
 0x1cf   : > { %4583 = vmatpush1.bf16.msra.mxu0 %v4582_v24  ;;  %v7599_v19 = vand.u32 4294901760, %v6697_v17  ;;  %v7604_v33 = vand.u32 4294901760, %v6717_v13  ;;  %v7610_v13 = vand.u32 4294901760, %v6746_v55 }
 0x1d0   : > { %4967 = vmatpush1.bf16.msra.mxu1 %v4582_v24  ;;  %4585 = vmatprep.subr.bf16.mxu0 %v4584_v23  ;;  %v4606_v24 = vpack.c.bf16 %v6700_v3, %v6697_v17  ;;  %v7605_v17 = vand.u32 4294901760, %v6725_v44  ;;  %v4682_v44 = vpack.c.bf16 %v1757_v22, %v1745_v41 }
 0x1d1   : > { %4969 = vmatprep.subr.bf16.mxu1 %v4584_v23  ;;  %v4616_v23 = vpack.c.bf16 %v6746_v55, %v6744_v2 }
 0x1d3   : > { %4587 = vmatpush1.bf16.msra.mxu0 %v4586_v61 }
 0x1d4   : > { %4971 = vmatpush1.bf16.msra.mxu1 %v4586_v61  ;;  %4589 = vmatprep.subr.bf16.mxu0 %v4588_v53  ;;  %v4620_v61 = vpack.c.bf16 %v6909_v57, %v6888_v51 }
 0x1d5   : > { %4973 = vmatprep.subr.bf16.mxu1 %v4588_v53  ;;  %v7571_v53 = vld [vmem:[#allocation23_spill] sm:$0xff] }
 0x1d7   : > { %4591 = vmatpush1.bf16.msra.mxu0 %v4590_v34 }
 0x1d8   : > { %4975 = vmatpush1.bf16.msra.mxu1 %v4590_v34  ;;  %4593 = vmatprep.subr.bf16.mxu0 %v4592_v20  ;;  %v7572_v34 = vld [vmem:[#allocation25_spill] sm:$0xff] }
 0x1d9   : > { %4977 = vmatprep.subr.bf16.mxu1 %v4592_v20  ;;  %v7573_v20 = vld [vmem:[#allocation27_spill] sm:$0xff] }
 0x1da   : > { %1819 = vmatmul.mubr.f32.vlgmr.msra.gmra.mrb[0].mxu0 %v6722_v46 }
 0x1db   : > { %4595 = vmatpush1.bf16.msra.mxu0 %v4594_v59  ;;  %3595 = vmatmul.mubr.f32.vlgmr.msra.gmra.mrb[0].mxu1 %v6729_v7 }
 0x1dc   : > { %4979 = vmatpush1.bf16.msra.mxu1 %v4594_v59  ;;  %4597 = vmatprep.subr.bf16.mxu0 %v4596_v16  ;;  %v7574_v59 = vld [vmem:[#allocation28_spill] sm:$0xff] }
 0x1dd   : > { %4981 = vmatprep.subr.bf16.mxu1 %v4596_v16  ;;  %1953 = vmatprep.mubr.f32.mxu0 %v7445_v29  ;;  %v7575_v16 = vld [vmem:[#allocation30_spill] sm:$0xff] }
 0x1de   : > { %3729 = vmatprep.mubr.f32.mxu1 %v7445_v29 }
 0x1df   : > { %4599 = vmatpush1.bf16.msra.mxu0 %v4598_v50 }
 0x1e0   : > { %4983 = vmatpush1.bf16.msra.mxu1 %v4598_v50  ;;  %4601 = vmatprep.subr.bf16.mxu0 %v4600_v6  ;;  %v7576_v50 = vld [vmem:[#allocation20_spill] sm:$0xff] }
 0x1e1   : > { %4985 = vmatprep.subr.bf16.mxu1 %v4600_v6  ;;  %v7577_v6 = vld [vmem:[#allocation55_spill] sm:$0xff] }
 0x1e3   : > { %4603 = vmatpush1.bf16.msra.mxu0 %v4602_v56 }
 0x1e4   : > { %4987 = vmatpush1.bf16.msra.mxu1 %v4602_v56  ;;  %4605 = vmatprep.subr.bf16.mxu0 %v4604_v28  ;;  %v7578_v56 = vld [vmem:[#allocation24_spill] sm:$0xff] }
 0x1e5   : > { %4989 = vmatprep.subr.bf16.mxu1 %v4604_v28  ;;  %v7579_v28 = vld [vmem:[#allocation56_spill] sm:$0xff] }
 0x1e7   : > { %4607 = vmatpush1.bf16.msra.mxu0 %v4606_v24 }
 0x1e8   : > { %4991 = vmatpush1.bf16.msra.mxu1 %v4606_v24  ;;  %4609 = vmatprep.subr.bf16.mxu0 %v4608_v30  ;;  %v7580_v24 = vld [vmem:[#allocation26_spill] sm:$0xff] }
 0x1e9   : > { %4993 = vmatprep.subr.bf16.mxu1 %v4608_v30  ;;  %v7581_v30 = vld [vmem:[#allocation29_spill] sm:$0xff] }
 0x1eb   : > { %4611 = vmatpush1.bf16.msra.mxu0 %v4610_v60 }
 0x1ec   : > { %4995 = vmatpush1.bf16.msra.mxu1 %v4610_v60  ;;  %4613 = vmatprep.subr.bf16.mxu0 %v4612_v12  ;;  %v7582_v60 = vld [vmem:[#allocation32_spill] sm:$0xff] }
 0x1ed   : > { %4997 = vmatprep.subr.bf16.mxu1 %v4612_v12  ;;  %v7583_v12 = vand.u32 4294901760, %v6623_v58  ;;  %v4660_v58 = vpack.c.bf16 %v7588_v63, %v7587_v8  ;;  %v4664_v63 = vpack.c.bf16 %v7594_v27, %v7593_v15 }
 0x1ef   : > { %4615 = vmatpush1.bf16.msra.mxu0 %v4614_v39 }
 0x1f0   : > { %4999 = vmatpush1.bf16.msra.mxu1 %v4614_v39  ;;  %4617 = vmatprep.subr.bf16.mxu0 %v4616_v23  ;;  %v7584_v39 = vand.u32 4294901760, %v6626_v45  ;;  %v7589_v45 = vand.u32 4294901760, %v6761_v49 }
 0x1f1   : > { %5001 = vmatprep.subr.bf16.mxu1 %v4616_v23 }
 0x1f2   : > { %v4656_v23 = vpack.c.bf16 %v7584_v39, %v7583_v12  ;;  %v7590_v12 = vand.u32 4294901760, %v6775_v11 }
 0x1f3   : > { %4619 = vmatpush1.bf16.msra.mxu0 %v4618_v40 }
 0x1f4   : > { %5003 = vmatpush1.bf16.msra.mxu1 %v4618_v40  ;;  %4621 = vmatprep.subr.bf16.mxu0 %v4620_v61  ;;  %v7585_v40 = vand.u32 4294901760, %v6632_v35  ;;  %v7591_v35 = vand.u32 4294901760, %v6657_v37  ;;  %v7596_v37 = vand.u32 4294901760, %v6689_v38  ;;  %v7602_v38 = vand.u32 4294901760, %v6710_v0 }
 0x1f5   : > { %5005 = vmatprep.subr.bf16.mxu1 %v4620_v61  ;;  %v7586_v61 = vand.u32 4294901760, %v6644_v1  ;;  %v7592_v1 = vand.u32 4294901760, %v6668_v48  ;;  %v7597_v48 = vand.u32 4294901760, %v6691_v43  ;;  %v7603_v43 = vand.u32 4294901760, %v6715_v9 }
 0x1f6   : > { %v7608_v0 = vand.u32 4294901760, %v6740_v62  ;;  %v7609_v9 = vand.u32 4294901760, %v6744_v2  ;;  %v7612_v62 = vand.u32 4294901760, %v6916_v21  ;;  %v7613_v2 = vand.u32 4294901760, %v6921_v32 }
 0x1f7   : > { %4623 = vmatpush1.bf16.msra.mxu0 %v4622_v18  ;;  %v4662_v39 = vpack.c.bf16 %v7592_v1, %v7591_v35  ;;  %v4668_v8 = vpack.c.bf16 %v7598_v54, %v7597_v48 }
 0x1f8   : > { %5007 = vmatpush1.bf16.msra.mxu1 %v4622_v18  ;;  %4625 = vmatprep.subr.bf16.mxu0 %v6617_v10  ;;  %v4658_v18 = vpack.c.bf16 %v7586_v61, %v7585_v40  ;;  %v4686_v55 = vpack.c.bf16 %v7613_v2, %v7612_v62 }
 0x1f9   : > { %5009 = vmatprep.subr.bf16.mxu1 %v6617_v10 }
 0x1fa   : > { %1956 = vmatmul.mubr.f32.vlgmr.msra.gmra.mrb[0].mxu0 %v6761_v49  ;;  %v7595_v49 = vand.u32 4294901760, %v6683_v4  ;;  %v7601_v4 = vand.u32 4294901760, %v6704_v31  ;;  %v7607_v31 = vand.u32 4294901760, %v6737_v25 }
 0x1fb   : > { %4627 = vmatpush1.bf16.msra.mxu0 %v6628_v14  ;;  %3732 = vmatmul.mubr.f32.vlgmr.msra.gmra.mrb[0].mxu1 %v6775_v11 }
 0x1fc   : > { %5011 = vmatpush1.bf16.msra.mxu1 %v6628_v14  ;;  %4629 = vmatprep.subr.bf16.mxu0 %v7570_v47  ;;  %v4666_v11 = vpack.c.bf16 %v7596_v37, %v7595_v49  ;;  %v4672_v61 = vpack.c.bf16 %v7602_v38, %v7601_v4 }
 0x1fd   : > { %5013 = vmatprep.subr.bf16.mxu1 %v7570_v47  ;;  %2058 = vmatprep.mubr.f32.mxu0 %v7445_v29 }
 0x1fe   : > { %3834 = vmatprep.mubr.f32.mxu1 %v7445_v29 }
 0x1ff   : > { %4631 = vmatpush1.bf16.msra.mxu0 %v7571_v53 }
 0x200   : > { %5015 = vmatpush1.bf16.msra.mxu1 %v7571_v53  ;;  %4633 = vmatprep.subr.bf16.mxu0 %v7572_v34 }
 0x201   : > { %5017 = vmatprep.subr.bf16.mxu1 %v7572_v34 }
 0x203   : > { %4635 = vmatpush1.bf16.msra.mxu0 %v7573_v20 }
 0x204   : > { %5019 = vmatpush1.bf16.msra.mxu1 %v7573_v20  ;;  %4637 = vmatprep.subr.bf16.mxu0 %v7574_v59 }
 0x205   : > { %5021 = vmatprep.subr.bf16.mxu1 %v7574_v59 }
 0x207   : > { %4639 = vmatpush1.bf16.msra.mxu0 %v7575_v16 }
 0x208   : > { %5023 = vmatpush1.bf16.msra.mxu1 %v7575_v16  ;;  %4641 = vmatprep.subr.bf16.mxu0 %v7576_v50 }
 0x209   : > { %5025 = vmatprep.subr.bf16.mxu1 %v7576_v50 }
 0x20b   : > { %4643 = vmatpush1.bf16.msra.mxu0 %v7577_v6 }
 0x20c   : > { %5027 = vmatpush1.bf16.msra.mxu1 %v7577_v6  ;;  %4645 = vmatprep.subr.bf16.mxu0 %v7578_v56 }
 0x20d   : > { %5029 = vmatprep.subr.bf16.mxu1 %v7578_v56 }
 0x20f   : > { %4647 = vmatpush1.bf16.msra.mxu0 %v7579_v28 }
 0x210   : > { %5031 = vmatpush1.bf16.msra.mxu1 %v7579_v28  ;;  %4649 = vmatprep.subr.bf16.mxu0 %v7580_v24 }
 0x211   : > { %5033 = vmatprep.subr.bf16.mxu1 %v7580_v24 }
 0x213   : > { %4651 = vmatpush1.bf16.msra.mxu0 %v7581_v30 }
 0x214   : > { %5035 = vmatpush1.bf16.msra.mxu1 %v7581_v30  ;;  %4653 = vmatprep.subr.bf16.mxu0 %v7582_v60 }
 0x215   : > { %5037 = vmatprep.subr.bf16.mxu1 %v7582_v60 }
 0x217   : > { %4655 = vmatpush1.bf16.msra.mxu0 %v6833_v5 }
 0x218   : > { %5039 = vmatpush1.bf16.msra.mxu1 %v6833_v5  ;;  %4657 = vmatprep.subr.bf16.mxu0 %v4656_v23 }
 0x219   : > { %5041 = vmatprep.subr.bf16.mxu1 %v4656_v23  ;;  %v7600_v23 = vand.u32 4294901760, %v6700_v3  ;;  %v7606_v3 = vand.u32 4294901760, %v6733_v26  ;;  %v7611_v26 = vand.u32 4294901760, %v6888_v51 }
 0x21a   : > { %2062 = vmatmul.mubr.f32.vlgmr.msra.gmra.mrb[0].mxu0 %v7589_v45  ;;  %v4678_v45 = vpack.c.bf16 %v7608_v0, %v7607_v31 }
 0x21b   : > { %4659 = vmatpush1.bf16.msra.mxu0 %v4658_v18  ;;  %3838 = vmatmul.mubr.f32.vlgmr.msra.gmra.mrb[0].mxu1 %v7590_v12  ;;  %v4670_v40 = vpack.c.bf16 %v7600_v23, %v7599_v19  ;;  %v4680_v12 = vpack.c.bf16 %v7610_v13, %v7609_v9  ;;  %v4684_v25 = vpack.c.bf16 %v1775_v52, %v7611_v26 }
 0x21c   : > { %5043 = vmatpush1.bf16.msra.mxu1 %v4658_v18  ;;  %4661 = vmatprep.subr.bf16.mxu0 %v4660_v58  ;;  %v4674_v18 = vpack.c.bf16 %v7604_v33, %v7603_v43 }
 0x21d   : > { %5045 = vmatprep.subr.bf16.mxu1 %v4660_v58  ;;  %2228 = vmatprep.mubr.f32.mxu0 %v7445_v29  ;;  %v4676_v58 = vpack.c.bf16 %v7606_v3, %v7605_v17 }
 0x21e   : > { %4004 = vmatprep.mubr.f32.mxu1 %v7445_v29 }
 0x21f   : > { %4663 = vmatpush1.bf16.msra.mxu0 %v4662_v39 }
 0x220   : > { %5047 = vmatpush1.bf16.msra.mxu1 %v4662_v39  ;;  %4665 = vmatprep.subr.bf16.mxu0 %v4664_v63 }
 0x221   : > { %5049 = vmatprep.subr.bf16.mxu1 %v4664_v63 }
 0x223   : > { %4667 = vmatpush1.bf16.msra.mxu0 %v4666_v11 }
 0x224   : > { %5051 = vmatpush1.bf16.msra.mxu1 %v4666_v11  ;;  %4669 = vmatprep.subr.bf16.mxu0 %v4668_v8 }
 0x225   : > { %5053 = vmatprep.subr.bf16.mxu1 %v4668_v8 }
 0x227   : > { %4671 = vmatpush1.bf16.msra.mxu0 %v4670_v40 }
 0x228   : > { %5055 = vmatpush1.bf16.msra.mxu1 %v4670_v40  ;;  %4673 = vmatprep.subr.bf16.mxu0 %v4672_v61 }
 0x229   : > { %5057 = vmatprep.subr.bf16.mxu1 %v4672_v61 }
 0x22b   : > { %4675 = vmatpush1.bf16.msra.mxu0 %v4674_v18 }
 0x22c   : > { %5059 = vmatpush1.bf16.msra.mxu1 %v4674_v18  ;;  %4677 = vmatprep.subr.bf16.mxu0 %v4676_v58 }
 0x22d   : > { %5061 = vmatprep.subr.bf16.mxu1 %v4676_v58 }
 0x22f   : > { %4679 = vmatpush1.bf16.msra.mxu0 %v4678_v45 }
 0x230   : > { %5063 = vmatpush1.bf16.msra.mxu1 %v4678_v45  ;;  %4681 = vmatprep.subr.bf16.mxu0 %v4680_v12 }
 0x231   : > { %5065 = vmatprep.subr.bf16.mxu1 %v4680_v12 }
 0x233   : > { %4683 = vmatpush1.bf16.msra.mxu0 %v4682_v44 }
 0x234   : > { %5067 = vmatpush1.bf16.msra.mxu1 %v4682_v44  ;;  %4685 = vmatprep.subr.bf16.mxu0 %v4684_v25 }
 0x235   : > { %5069 = vmatprep.subr.bf16.mxu1 %v4684_v25 }
 0x237   : > { %4687 = vmatpush1.bf16.msra.mxu0 %v4686_v55 }
 0x238   : > { %5071 = vmatpush1.bf16.msra.mxu1 %v4686_v55  ;;  %4689 = vmatprep.subr.bf16.mxu0 %v6617_v10 }
 0x239   : > { %5073 = vmatprep.subr.bf16.mxu1 %v6617_v10 }
 0x23a   : > { %2230 = vmatmul.mubr.f32.vlgmr.msra.gmra.mrb[0].mxu0 %v6722_v46 }
 0x23b   : > { %4691 = vmatpush1.bf16.msra.mxu0 %v6628_v14  ;;  %4006 = vmatmul.mubr.f32.vlgmr.msra.gmra.mrb[0].mxu1 %v6729_v7 }
 0x23c   : > { %5075 = vmatpush1.bf16.msra.mxu1 %v6628_v14  ;;  %4693 = vmatprep.subr.bf16.mxu0 %v7570_v47 }
 0x23d   : > { %5077 = vmatprep.subr.bf16.mxu1 %v7570_v47  ;;  %2332 = vmatprep.mubr.f32.mxu0 %v7445_v29 }
 0x23e   : > { %4108 = vmatprep.mubr.f32.mxu1 %v7445_v29 }
 0x23f   : > { %4695 = vmatpush1.bf16.msra.mxu0 %v7571_v53 }
 0x240   : > { %5079 = vmatpush1.bf16.msra.mxu1 %v7571_v53  ;;  %4697 = vmatprep.subr.bf16.mxu0 %v7572_v34 }
 0x241   : > { %5081 = vmatprep.subr.bf16.mxu1 %v7572_v34 }
 0x243   : > { %4699 = vmatpush1.bf16.msra.mxu0 %v7573_v20 }
 0x244   : > { %5083 = vmatpush1.bf16.msra.mxu1 %v7573_v20  ;;  %4701 = vmatprep.subr.bf16.mxu0 %v7574_v59 }
 0x245   : > { %5085 = vmatprep.subr.bf16.mxu1 %v7574_v59 }
 0x247   : > { %4703 = vmatpush1.bf16.msra.mxu0 %v7575_v16 }
 0x248   : > { %5087 = vmatpush1.bf16.msra.mxu1 %v7575_v16  ;;  %4705 = vmatprep.subr.bf16.mxu0 %v7576_v50 }
 0x249   : > { %5089 = vmatprep.subr.bf16.mxu1 %v7576_v50 }
 0x24b   : > { %4707 = vmatpush1.bf16.msra.mxu0 %v7577_v6 }
 0x24c   : > { %5091 = vmatpush1.bf16.msra.mxu1 %v7577_v6  ;;  %4709 = vmatprep.subr.bf16.mxu0 %v7578_v56 }
 0x24d   : > { %5093 = vmatprep.subr.bf16.mxu1 %v7578_v56 }
 0x24f   : > { %4711 = vmatpush1.bf16.msra.mxu0 %v7579_v28 }
 0x250   : > { %5095 = vmatpush1.bf16.msra.mxu1 %v7579_v28  ;;  %4713 = vmatprep.subr.bf16.mxu0 %v7580_v24 }
 0x251   : > { %5097 = vmatprep.subr.bf16.mxu1 %v7580_v24 }
 0x253   : > { %4715 = vmatpush1.bf16.msra.mxu0 %v7581_v30 }
 0x254   : > { %5099 = vmatpush1.bf16.msra.mxu1 %v7581_v30  ;;  %4717 = vmatprep.subr.bf16.mxu0 %v7582_v60 }
 0x255   : > { %5101 = vmatprep.subr.bf16.mxu1 %v7582_v60 }
 0x257   : > { %4719 = vmatpush1.bf16.msra.mxu0 %v6833_v5 }
 0x258   : > { %5103 = vmatpush1.bf16.msra.mxu1 %v6833_v5 }
 0x25a   : > { %2334 = vmatmul.mubr.f32.vlgmr.msra.gmra.mrb[0].mxu0 %v6722_v46 }
 0x25b   : > { %4110 = vmatmul.mubr.f32.vlgmr.msra.gmra.mrb[0].mxu1 %v6729_v7 }
 0x32d   : > { %v2335_v29 = vpop.f32.mrb[0].mxu0 }
 0x32e   : > { %2340 = vst [vmem:[%s315_s0] sm:$0xff] %v2335_v29  ;;  %v4111_v10 = vpop.f32.mrb[0].mxu1  ;;  %v2337_v14 = vpop.f32.mrb[1].mxu0 }
 0x32f   : > { %4328 = vst [vmem:[%s315_s0 + $0x10] sm:$0xff] %v4111_v10  ;;  %2341 = vst [vmem:[%s315_s0 + $0x8] sm:$0xff] %v2337_v14  ;;  %v4113_v5 = vpop.f32.mrb[1].mxu1 }
 0x330   : > { %4329 = vst [vmem:[%s315_s0 + $0x18] sm:$0xff] %v4113_v5 }
 0x331   : > { %5383 = shalt.err (!%p5380_p6)
}
 0x332   : > { %s5384_s9 = scalar_lea.hbm %s7146_s26, 512  ;;  %s5388_s12 = scalar_lea.hbm %s7195_s5, 1024 }
 0x333   : > { %p5385_p0 = scmp.ne.s32.totalorder %s7146_s26, %s5384_s9  ;;  %p5389_p11 = scmp.lt.u32.totalorder %s7146_s26, %s7195_s5 }
 0x334   : > { %p5390_p3 = scmp.lt.u32.totalorder %s5388_s12, %s5384_s9  ;;  %p5392_p9 = scmp.lt.u32.totalorder %s5384_s9, %s7146_s26 }
 0x335   : > { %p5386_p12 = pnand %p5385_p0, %p7614_p13 }
 0x336   : > { %p5391_p7 = por %p5390_p3, %p5389_p11 }
 0x337   : > { %p5387_p8 = pneg %p5386_p12 }
 0x338   : > { %p5393_p5 = por %p5392_p9, %p5391_p7 }
 0x33a   : > { %p5394_p10 = pnand %p5393_p5, %p5387_p8 }
 0x33c   : > { %5397 = shalt.err (!%p5394_p10)
}
 0x33d   : > { %s5463_s14 = smov 256   ;;  %s5464_s2 = smov 512  }
 0x33e   : > { %s5465_s3 = smov 16  }
 0x33f   : > { %5164 = dma.vmem_to_hbm [thread:$0]  (%p7614_p13), %s7141_s7, 512, %s7146_s26, %s4120_s16, %s5463_s14, %s5464_s2, %s5465_s3  }
 0x340 PF: > { %s4148_s4 = sand.u32 1, %s5440_s18   ;;  %p7615_p2 = scmp.ne.s32.totalorder %s7361_s25, 0 }
 0x341   : > { %p7616_p4 = scmp.ge.s32.totalorder %s5452_s21, 2  ;;  %s4149_s29 = scalar_lea.sflag [#allocation4], %s4148_s4 }
 0x343   : > { %p5184_p1 = pnand %p7616_p4, %p7615_p2 }
 0x345   : > { %5435 = dma.done.wait (!%p5184_p1), %s4149_s29, 512  }
 0x346   : > { %5437 = vsyncadd (!%p5184_p1), %s4149_s29, 4294966784  ;;  %s7617_s0 = sld [smem:[#allocation19_spill]]  ;;  %p23_p6 = scmp.ge.s32.totalorder %s5604_s17, 4  }
 0x347   : > { %s7618_s18 = smov %s5444_s19  ;;  %s7619_s19 = smov %s5448_s20 }
 0x348   : > { %s7621_s21 = smov %s5604_s17  ;;  %25 = sbr.rel (!%p23_p6) target bundleno = 15 (0xf), region = 114 }
 0x34c   : > { %s7620_s20 = smov %s7617_s0 }
 0x34f   :  { %4154 = vsyncpa [#allocation3], 1 }
 0x350   :  { %4156 = vsyncpa [#allocation3 + $0x1], 1 }
 0x351   :  { %4157 = vsyncpa [#allocation10], 1 }
 0x352   :  { %4159 = vsyncpa [#allocation10 + $0x1], 1 }
 0x353   :  { %4160 = vsyncpa [#allocation4], 1 }
 0x354   :  { %4162 = vsyncpa [#allocation4 + $0x1], 1 }
 0x355   :  { %4163 = vsyncpa [#allocation5], 1 }
 0x356   :  { %4165 = vsyncpa [#allocation5 + $0x1], 1 }
 0x357   :  { %4166 = vsyncpa [#allocation6], 1 }
 0x358   :  { %4168 = vsyncpa [#allocation6 + $0x1], 1 }

</bundles_post_ra>
